<compile_context>
chip_gen: v7x
topology: tpu7x:2x2x1
jax: 0.10.0
libtpu: 0.0.40
codegen_flags: <defaults>
</compile_context>

<pallas_src>
import functools

import jax
import jax.numpy as jnp
from jax.experimental import pallas as pl
from jax.experimental.pallas import tpu as pltpu

LANES = 128


def _round_up(n: int, m: int) -> int:
    return ((n + m - 1) // m) * m


def _pad2d(a, rows, cols):
    r, c = a.shape
    if r == rows and c == cols:
        return a
    return jnp.pad(a, ((0, rows - r), (0, cols - c)))


# -----------------------------------------------------------------------------
# One-time parameter preparation (hoisted out of the per-call hot path).
# Weights are in (fan_in, fan_out) layout (torch weight transposed),
# biases are (1, fan_out).
# -----------------------------------------------------------------------------
def prepare_params(w1, b1, wm, bm, wv, bv, wd1, bd1, wd2, bd2, input_dim):
    H = w1.shape[1]          # hidden_dim
    L = wm.shape[1]          # latent_dim
    O = wd2.shape[1]         # output_dim
    dim_c = w1.shape[0] - input_dim

    Hp = _round_up(H, LANES)     # padded hidden width (lane aligned)
    Lp = LANES                   # each half of the fused mean/log_var weight
    assert L <= Lp and O <= LANES

    # Concat-free first layer: cat(x,c)@W1 == x@W1[:in] + c@W1[in:]
    w1x = _pad2d(w1[:input_dim, :], input_dim, Hp)
    w1c = _pad2d(w1[input_dim:, :], dim_c, Hp)

    # Fused mean/log_var weight: (Hp, 2*Lp), split later at the 128-lane boundary.
    wmv = jnp.concatenate([_pad2d(wm, Hp, Lp), _pad2d(wv, Hp, Lp)], axis=1)

    wd1p = _pad2d(wd1, L, Hp)    # (L, Hp)    decoder hidden (K = L contraction)
    wd2p = _pad2d(wd2, Hp, O)    # (Hp, O)    decoder output (real O lanes only)

    # All biases packed into one small resident slab:
    #   row 0: b_in (Hp), row 1: [b_mean | b_log_var] (2*Lp),
    #   row 2: b_dec_hidden (Hp), row 3: b_dec_output (O)
    bias = jnp.zeros((4, 2 * Lp), jnp.float32)
    bias = bias.at[0, :H].set(jnp.asarray(b1, jnp.float32).reshape(-1))
    bias = bias.at[1, :L].set(jnp.asarray(bm, jnp.float32).reshape(-1))
    bias = bias.at[1, Lp:Lp + L].set(jnp.asarray(bv, jnp.float32).reshape(-1))
    bias = bias.at[2, :H].set(jnp.asarray(bd1, jnp.float32).reshape(-1))
    bias = bias.at[3, :O].set(jnp.asarray(bd2, jnp.float32).reshape(-1))

    return {
        "w1x": jnp.asarray(w1x, jnp.float32),
        "w1c": jnp.asarray(w1c, jnp.float32),
        "wmv": jnp.asarray(wmv, jnp.float32),
        "wd1": jnp.asarray(wd1p, jnp.float32),
        "wd2": jnp.asarray(wd2p, jnp.float32),
        "bias": bias,
    }


# -----------------------------------------------------------------------------
# Fused forward kernel: 5 matmuls + relu/exp/tanh, one lane-dense packed output.
# -----------------------------------------------------------------------------
def _cvae_kernel(x_ref, c_ref, eps_ref,
                 w1x_ref, w1c_ref, wmv_ref, wd1_ref, wd2_ref, bias_ref,
                 slab_ref):
    Hp = w1x_ref.shape[1]
    Lp = wmv_ref.shape[1] // 2
    L = eps_ref.shape[1]
    O = wd2_ref.shape[1]

    b1 = bias_ref[0:1, 0:Hp]          # (1, Hp)
    bmv = bias_ref[1:2, :]            # (1, 2*Lp)
    bd1 = bias_ref[2:3, 0:Hp]         # (1, Hp)
    bd2 = bias_ref[3:4, 0:O]          # (1, O)

    # ---- CondEncoder (concat-free first layer) ----
    h = jnp.dot(x_ref[...], w1x_ref[...], preferred_element_type=jnp.float32)
    h = h + jnp.dot(c_ref[...], w1c_ref[...], preferred_element_type=jnp.float32)
    h = jnp.maximum(h + b1, 0.0)                                   # relu, (bb, Hp)

    # Fused mean/log_var projection: one N = 2*Lp (=256) matmul,
    # split at the 128-lane vreg boundary (free).
    mv = jnp.dot(h, wmv_ref[...], preferred_element_type=jnp.float32) + bmv
    mean = mv[:, 0:L]                 # (bb, L)  real latent lanes only
    log_var = mv[:, Lp:Lp + L]        # (bb, L)

    var = jnp.exp(0.5 * log_var)
    z = mean + eps_ref[...] * var                                  # reparameterize

    # ---- Decoder ----
    hd = jnp.tanh(
        jnp.dot(z, wd1_ref[...], preferred_element_type=jnp.float32) + bd1)
    out = jnp.dot(hd, wd2_ref[...], preferred_element_type=jnp.float32) + bd2

    # ---- Pack everything into one lane-dense slab [out | z | mean | var | lv | 0] ----
    pad = slab_ref.shape[1] - (O + 4 * L)
    pieces = [out, z, mean, var, log_var]
    if pad > 0:
        pieces.append(jnp.zeros((out.shape[0], pad), jnp.float32))
    slab_ref[...] = jnp.concatenate(pieces, axis=-1).astype(slab_ref.dtype)


@functools.partial(jax.jit, static_argnames=("block_b",))
def cvae_forward(x, c, eps, params, *, block_b=512):
    """Pallas CondVariationalAutoEncoder.forward(x, c) with pre-padded params."""
    B, input_dim = x.shape
    dim_c = c.shape[1]
    L = eps.shape[1]

    w1x, w1c, wmv = params["w1x"], params["w1c"], params["wmv"]
    wd1, wd2, bias = params["wd1"], params["wd2"], params["bias"]
    O = wd2.shape[1]
    SLAB = _round_up(O + 4 * L, LANES)     # packed output width (lane dense)

    # Batch tile: multiple of 8, <= block_b; keep >= 2 grid steps when the
    # batch allows so both v7x TensorCores get a tile.
    bb = min(block_b, _round_up(B, 8))
    if B > 8 and _round_up(B, bb) // bb < 2:
        bb = max(8, _round_up((B + 1) // 2, 8))
    Bp = _round_up(B, bb)

    if Bp != B:
        x = jnp.pad(x, ((0, Bp - B), (0, 0)))
        c = jnp.pad(c, ((0, Bp - B), (0, 0)))
        eps = jnp.pad(eps, ((0, Bp - B), (0, 0)))

    grid = (Bp // bb,)

    def tile(feat):
        # last block dim equals the full array dim (or 128 for the slab) -> legal
        return pl.BlockSpec((bb, feat), lambda i: (i, 0))

    def resident(arr):
        # block == full array; same block index every step -> loaded once,
        # stays VMEM-resident across batch tiles.
        return pl.BlockSpec(arr.shape, lambda i: (0, 0))

    slab = pl.pallas_call(
        _cvae_kernel,
        out_shape=jax.ShapeDtypeStruct((Bp, SLAB), jnp.float32),
        grid_spec=pltpu.PrefetchScalarGridSpec(
            num_scalar_prefetch=0,
            grid=grid,
            in_specs=[
                tile(input_dim),          # x
                tile(dim_c),              # c
                tile(L),                  # eps (unpadded latent width)
                resident(w1x),            # w1 (x part)
                resident(w1c),            # w1 (c part)
                resident(wmv),            # fused [w_mean | w_log_var]
                resident(wd1),            # w_dec_hidden
                resident(wd2),            # w_dec_output
                resident(bias),           # packed bias slab
            ],
            out_specs=tile(SLAB),         # single lane-dense packed output
        ),
        compiler_params=pltpu.CompilerParams(
            dimension_semantics=("parallel",),
        ),
    )(x, c, eps, w1x, w1c, wmv, wd1, wd2, bias)

    out = slab[:B, 0:O]
    z = slab[:B, O:O + L]
    mean = slab[:B, O + L:O + 2 * L]
    var = slab[:B, O + 2 * L:O + 3 * L]
    log_var = slab[:B, O + 3 * L:O + 4 * L]
    return out, z, mean, var, log_var


def reference_forward(x, c, eps, w1, b1, wm, bm, wv, bv, wd1, bd1, wd2, bd2):
    xc = jnp.concatenate((x, c), axis=1)
    h = jnp.maximum(xc @ w1 + b1, 0.0)
    mean = h @ wm + bm
    log_var = h @ wv + bv
    var = jnp.exp(0.5 * log_var)
    z = mean + eps * var
    hd = jnp.tanh(z @ wd1 + bd1)
    out = hd @ wd2 + bd2
    return out, z, mean, var, log_var


# TODO(synk): train_model / VAELoss (Adamax training loop, DataLoader) are
# host-side torch training utilities, not part of the forward pass; not translated.

if __name__ == "__main__":
    # Small shapes consistent with the module's constructor arguments.
    input_dim, dim_c, hidden_dim, latent_dim, output_dim = 32, 16, 64, 16, 32
    batch = 256

    key = jax.random.PRNGKey(0)
    keys = jax.random.split(key, 13)

    def init_linear(kw, kb, fan_in, fan_out):
        bound = 1.0 / jnp.sqrt(jnp.float32(fan_in))
        w = jax.random.uniform(kw, (fan_in, fan_out), jnp.float32, -bound, bound)
        b = jax.random.uniform(kb, (1, fan_out), jnp.float32, -bound, bound)
        return w, b

    x = jax.random.normal(keys[0], (batch, input_dim), jnp.float32)
    c = jax.random.normal(keys[1], (batch, dim_c), jnp.float32)
    # Reparameterization noise (torch.randn_like equivalent), passed explicitly
    # so the Pallas kernel and the reference see identical randomness.
    eps = jax.random.normal(keys[2], (batch, latent_dim), jnp.float32)

    w1, b1 = init_linear(keys[3], keys[4], input_dim + dim_c, hidden_dim)
    wm, bm = init_linear(keys[5], keys[6], hidden_dim, latent_dim)
    wv, bv = init_linear(keys[7], keys[8], hidden_dim, latent_dim)
    wd1, bd1 = init_linear(keys[9], keys[10], latent_dim, hidden_dim)
    wd2, bd2 = init_linear(keys[11], keys[12], hidden_dim, output_dim)

    # One-time (init-time) padding / fusion of the parameters.
    params = prepare_params(w1, b1, wm, bm, wv, bv, wd1, bd1, wd2, bd2, input_dim)
    params = jax.tree_util.tree_map(jax.block_until_ready, params)

    got = cvae_forward(x, c, eps, params, block_b=512)
    got = jax.block_until_ready(got)

    want = reference_forward(x, c, eps, w1, b1, wm, bm, wv, bv, wd1, bd1, wd2, bd2)

    names = ("output", "z", "mean", "var", "log_var")
    for name, g, w in zip(names, got, want):
        assert g.shape == w.shape, f"shape mismatch in {name}: {g.shape} vs {w.shape}"
        assert jnp.allclose(g, w, atol=1e-3, rtol=1e-3), f"value mismatch in {name}"

    print("KERNEL_OK")
</pallas_src>

<mosaic_0001>
module attributes {stable_mosaic.version = 11 : i64} {
  func.func @_cvae_kernel(%arg0: i32, %arg1: memref<128x32xf32, #tpu.memory_space<vmem>>, %arg2: memref<128x16xf32, #tpu.memory_space<vmem>>, %arg3: memref<128x16xf32, #tpu.memory_space<vmem>>, %arg4: memref<32x128xf32, #tpu.memory_space<vmem>>, %arg5: memref<16x128xf32, #tpu.memory_space<vmem>>, %arg6: memref<128x256xf32, #tpu.memory_space<vmem>>, %arg7: memref<16x128xf32, #tpu.memory_space<vmem>>, %arg8: memref<128x32xf32, #tpu.memory_space<vmem>>, %arg9: memref<4x256xf32, #tpu.memory_space<vmem>>, %arg10: memref<128x128xf32, #tpu.memory_space<vmem>>) attributes {dimension_semantics = [#tpu.dimension_semantics<parallel>], iteration_bounds = array<i64: 2>, scalar_prefetch = 0 : i64, scratch_operands = 0 : i64, tpu.core_type = #tpu.core_type<tc>, window_params = [{transform_indices = @transform_0, window_bounds = array<i64: 128, 32>}, {transform_indices = @transform_1, window_bounds = array<i64: 128, 16>}, {transform_indices = @transform_2, window_bounds = array<i64: 128, 16>}, {pipeline_mode = #tpu.pipeline_mode<synchronous>, transform_indices = @transform_3, window_bounds = array<i64: 32, 128>}, {pipeline_mode = #tpu.pipeline_mode<synchronous>, transform_indices = @transform_4, window_bounds = array<i64: 16, 128>}, {pipeline_mode = #tpu.pipeline_mode<synchronous>, transform_indices = @transform_5, window_bounds = array<i64: 128, 256>}, {pipeline_mode = #tpu.pipeline_mode<synchronous>, transform_indices = @transform_6, window_bounds = array<i64: 16, 128>}, {pipeline_mode = #tpu.pipeline_mode<synchronous>, transform_indices = @transform_7, window_bounds = array<i64: 128, 32>}, {pipeline_mode = #tpu.pipeline_mode<synchronous>, transform_indices = @transform_8, window_bounds = array<i64: 4, 256>}, {transform_indices = @transform_9, window_bounds = array<i64: 128, 128>}]} {
    %c0 = arith.constant 0 : index
    %c0_0 = arith.constant 0 : index
    %0 = vector.load %arg9[%c0, %c0_0] : memref<4x256xf32, #tpu.memory_space<vmem>>, vector<1x128xf32>
    %c1 = arith.constant 1 : index
    %c0_1 = arith.constant 0 : index
    %1 = vector.load %arg9[%c1, %c0_1] : memref<4x256xf32, #tpu.memory_space<vmem>>, vector<1x256xf32>
    %c2 = arith.constant 2 : index
    %c0_2 = arith.constant 0 : index
    %2 = vector.load %arg9[%c2, %c0_2] : memref<4x256xf32, #tpu.memory_space<vmem>>, vector<1x128xf32>
    %c3 = arith.constant 3 : index
    %c0_3 = arith.constant 0 : index
    %3 = vector.load %arg9[%c3, %c0_3] : memref<4x256xf32, #tpu.memory_space<vmem>>, vector<1x32xf32>
    %c0_4 = arith.constant 0 : index
    %c0_5 = arith.constant 0 : index
    %4 = vector.load %arg1[%c0_4, %c0_5] : memref<128x32xf32, #tpu.memory_space<vmem>>, vector<128x32xf32>
    %c0_6 = arith.constant 0 : index
    %c0_7 = arith.constant 0 : index
    %5 = vector.load %arg4[%c0_6, %c0_7] : memref<32x128xf32, #tpu.memory_space<vmem>>, vector<32x128xf32>
    %cst = arith.constant dense<0.000000e+00> : vector<128x128xf32>
    %6 = tpu.matmul %4, %5, %cst {dimension_numbers = #tpu.dot_dimension_numbers<[1], [0], [0], [1], [0, 0, 1, 1], [], []>} : vector<128x32xf32>, vector<32x128xf32>, vector<128x128xf32> -> vector<128x128xf32>
    %c0_8 = arith.constant 0 : index
    %c0_9 = arith.constant 0 : index
    %7 = vector.load %arg2[%c0_8, %c0_9] : memref<128x16xf32, #tpu.memory_space<vmem>>, vector<128x16xf32>
    %c0_10 = arith.constant 0 : index
    %c0_11 = arith.constant 0 : index
    %8 = vector.load %arg5[%c0_10, %c0_11] : memref<16x128xf32, #tpu.memory_space<vmem>>, vector<16x128xf32>
    %cst_12 = arith.constant dense<0.000000e+00> : vector<128x128xf32>
    %9 = tpu.matmul %7, %8, %cst_12 {dimension_numbers = #tpu.dot_dimension_numbers<[1], [0], [0], [1], [0, 0, 1, 1], [], []>} : vector<128x16xf32>, vector<16x128xf32>, vector<128x128xf32> -> vector<128x128xf32>
    %10 = arith.addf %6, %9 : vector<128x128xf32>
    %11 = vector.broadcast %0 : vector<1x128xf32> to vector<128x128xf32>
    %12 = arith.addf %10, %11 : vector<128x128xf32>
    %cst_13 = arith.constant 0.000000e+00 : f32
    %13 = vector.broadcast %cst_13 : f32 to vector<128x128xf32>
    %14 = arith.maximumf %12, %13 : vector<128x128xf32>
    %c0_14 = arith.constant 0 : index
    %c0_15 = arith.constant 0 : index
    %15 = vector.load %arg6[%c0_14, %c0_15] : memref<128x256xf32, #tpu.memory_space<vmem>>, vector<128x256xf32>
    %cst_16 = arith.constant dense<0.000000e+00> : vector<128x256xf32>
    %16 = tpu.matmul %14, %15, %cst_16 {dimension_numbers = #tpu.dot_dimension_numbers<[1], [0], [0], [1], [0, 0, 1, 1], [], []>} : vector<128x128xf32>, vector<128x256xf32>, vector<128x256xf32> -> vector<128x256xf32>
    %17 = vector.broadcast %1 : vector<1x256xf32> to vector<128x256xf32>
    %18 = arith.addf %16, %17 : vector<128x256xf32>
    %19 = vector.extract_strided_slice %18 {offsets = [0, 0], sizes = [128, 16], strides = [1, 1]} : vector<128x256xf32> to vector<128x16xf32>
    %20 = vector.extract_strided_slice %18 {offsets = [0, 128], sizes = [128, 16], strides = [1, 1]} : vector<128x256xf32> to vector<128x16xf32>
    %cst_17 = arith.constant 5.000000e-01 : f32
    %21 = vector.broadcast %cst_17 : f32 to vector<128x16xf32>
    %22 = arith.mulf %21, %20 : vector<128x16xf32>
    %23 = math.exp %22 : vector<128x16xf32>
    %c0_18 = arith.constant 0 : index
    %c0_19 = arith.constant 0 : index
    %24 = vector.load %arg3[%c0_18, %c0_19] : memref<128x16xf32, #tpu.memory_space<vmem>>, vector<128x16xf32>
    %25 = arith.mulf %24, %23 : vector<128x16xf32>
    %26 = arith.addf %19, %25 : vector<128x16xf32>
    %c0_20 = arith.constant 0 : index
    %c0_21 = arith.constant 0 : index
    %27 = vector.load %arg7[%c0_20, %c0_21] : memref<16x128xf32, #tpu.memory_space<vmem>>, vector<16x128xf32>
    %cst_22 = arith.constant dense<0.000000e+00> : vector<128x128xf32>
    %28 = tpu.matmul %26, %27, %cst_22 {dimension_numbers = #tpu.dot_dimension_numbers<[1], [0], [0], [1], [0, 0, 1, 1], [], []>} : vector<128x16xf32>, vector<16x128xf32>, vector<128x128xf32> -> vector<128x128xf32>
    %29 = vector.broadcast %2 : vector<1x128xf32> to vector<128x128xf32>
    %30 = arith.addf %28, %29 : vector<128x128xf32>
    %31 = math.tanh %30 : vector<128x128xf32>
    %c0_23 = arith.constant 0 : index
    %c0_24 = arith.constant 0 : index
    %32 = vector.load %arg8[%c0_23, %c0_24] : memref<128x32xf32, #tpu.memory_space<vmem>>, vector<128x32xf32>
    %cst_25 = arith.constant dense<0.000000e+00> : vector<128x32xf32>
    %33 = tpu.matmul %31, %32, %cst_25 {dimension_numbers = #tpu.dot_dimension_numbers<[1], [0], [0], [1], [0, 0, 1, 1], [], []>} : vector<128x128xf32>, vector<128x32xf32>, vector<128x32xf32> -> vector<128x32xf32>
    %34 = vector.broadcast %3 : vector<1x32xf32> to vector<128x32xf32>
    %35 = arith.addf %33, %34 : vector<128x32xf32>
    %cst_26 = arith.constant 0.000000e+00 : f32
    %36 = vector.broadcast %cst_26 : f32 to vector<128x32xf32>
    %37 = tpu.concatenate %35, %26, %19, %23, %20, %36 in 1 : vector<128x32xf32>, vector<128x16xf32>, vector<128x16xf32>, vector<128x16xf32>, vector<128x16xf32>, vector<128x32xf32> -> vector<128x128xf32>
    %c0_27 = arith.constant 0 : index
    %c0_28 = arith.constant 0 : index
    %38 = vector.load %arg10[%c0_27, %c0_28] : memref<128x128xf32, #tpu.memory_space<vmem>>, vector<128x128xf32>
    tpu.vector_store %arg10[%c0_27, %c0_28], %37 {strides = array<i32>} : memref<128x128xf32, #tpu.memory_space<vmem>>, vector<128x128xf32>,
    return
  }
  func.func @transform_0(%arg0: i32) -> (i32, i32) {
    %c0_i32 = arith.constant 0 : i32
    %c0_i32_0 = arith.constant 0 : i32
    return %arg0, %c0_i32 : i32, i32
  }
  func.func @transform_1(%arg0: i32) -> (i32, i32) {
    %c0_i32 = arith.constant 0 : i32
    %c0_i32_0 = arith.constant 0 : i32
    return %arg0, %c0_i32 : i32, i32
  }
  func.func @transform_2(%arg0: i32) -> (i32, i32) {
    %c0_i32 = arith.constant 0 : i32
    %c0_i32_0 = arith.constant 0 : i32
    return %arg0, %c0_i32 : i32, i32
  }
  func.func @transform_3(%arg0: i32) -> (i32, i32) {
    %c0_i32 = arith.constant 0 : i32
    %c0_i32_0 = arith.constant 0 : i32
    %c0_i32_1 = arith.constant 0 : i32
    return %c0_i32, %c0_i32_0 : i32, i32
  }
  func.func @transform_4(%arg0: i32) -> (i32, i32) {
    %c0_i32 = arith.constant 0 : i32
    %c0_i32_0 = arith.constant 0 : i32
    %c0_i32_1 = arith.constant 0 : i32
    return %c0_i32, %c0_i32_0 : i32, i32
  }
  func.func @transform_5(%arg0: i32) -> (i32, i32) {
    %c0_i32 = arith.constant 0 : i32
    %c0_i32_0 = arith.constant 0 : i32
    %c0_i32_1 = arith.constant 0 : i32
    return %c0_i32, %c0_i32_0 : i32, i32
  }
  func.func @transform_6(%arg0: i32) -> (i32, i32) {
    %c0_i32 = arith.constant 0 : i32
    %c0_i32_0 = arith.constant 0 : i32
    %c0_i32_1 = arith.constant 0 : i32
    return %c0_i32, %c0_i32_0 : i32, i32
  }
  func.func @transform_7(%arg0: i32) -> (i32, i32) {
    %c0_i32 = arith.constant 0 : i32
    %c0_i32_0 = arith.constant 0 : i32
    %c0_i32_1 = arith.constant 0 : i32
    return %c0_i32, %c0_i32_0 : i32, i32
  }
  func.func @transform_8(%arg0: i32) -> (i32, i32) {
    %c0_i32 = arith.constant 0 : i32
    %c0_i32_0 = arith.constant 0 : i32
    %c0_i32_1 = arith.constant 0 : i32
    return %c0_i32, %c0_i32_0 : i32, i32
  }
  func.func @transform_9(%arg0: i32) -> (i32, i32) {
    %c0_i32 = arith.constant 0 : i32
    %c0_i32_0 = arith.constant 0 : i32
    return %arg0, %c0_i32 : i32, i32
  }
}

</mosaic_0001>

<bundles_post_ra>
// kernel: cvae_forward.1
= control target key start
LH: loop header
LB: loop body
LE: loop exit
PB: predicated region body
PF: predicated region fallthrough
CT: control target
= control target key end

     0   :  { %s2498_s30 = smov 0   ;;  %s3425_s0 = inlined_call_operand.vmem [shape: f32[256,32], index: 0, kind: input, shape index: {}]   ;;  %s3426_s1 = inlined_call_operand.vmem [shape: f32[256,16], index: 1, kind: input, shape index: {}]   ;;  %s3427_s2 = inlined_call_operand.vmem [shape: f32[256,16], index: 2, kind: input, shape index: {}]   ;;  %s3428_s3 = inlined_call_operand.vmem [shape: f32[32,128], index: 3, kind: input, shape index: {}]   ;;  %s3429_s4 = inlined_call_operand.vmem [shape: f32[16,128], index: 4, kind: input, shape index: {}]   ;;  %s3430_s5 = inlined_call_operand.vmem [shape: f32[128,256], index: 5, kind: input, shape index: {}]   ;;  %s3431_s6 = inlined_call_operand.vmem [shape: f32[16,128], index: 6, kind: input, shape index: {}]   ;;  %s3432_s7 = inlined_call_operand.vmem [shape: f32[128,32], index: 7, kind: input, shape index: {}]   ;;  %s3433_s8 = inlined_call_operand.vmem [shape: f32[4,256], index: 8, kind: input, shape index: {}]   ;;  %s3434_s9 = inlined_call_operand.vmem [shape: f32[256,128], index: 9, kind: output, shape index: {}]  }
   0x1 LB: > { %s1947_s10 = sadd.s32 4294967295, %s2441_s30   ;;  %p1951_p0 = scmp.ge.s32.totalorder %s2441_s30, 1  ;;  %s2441_s30 = sphi %s2498_s30, %s19_s30  }
   0x2   : > { %p310_p1 = scmp.lt.s32.totalorder %s2441_s30, 3 }
   0x4   : > { %p311_p2 = pnand %p1951_p0, %p310_p1 }
   0x5   : > { %v421_v0 = vld [vmem:[%s3429_s4] sm:$0xff] (!%p311_p2)  ;;  %v422_v1 = vld [vmem:[%s3429_s4 + $0x8] sm:$0xff] (!%p311_p2)  ;;  %s1952_s15 = sshll.u32 (!%p311_p2), %s1947_s10, 4  ;;  %v850_v7 = vld [vmem:[%s3430_s5 + $0x18] sm:$0xff] (!%p311_p2)  ;;  %vm423_vm0 = vcmask (!%p311_p2), 130048   ;;  %vm617_vm1 = vcmask (!%p311_p2), 261120  }
   0x6   : > { %314 = sbr.rel (%p311_p2) target bundleno = 1001 (0x3e9), region = 56  ;;  %v401_v2 = vld [vmem:[%s3428_s3] sm:$0xff] (!%p311_p2)  ;;  %v2246_v3 = vpack.c.bf16 (!%p311_p2), %v422_v1, %v421_v0  ;;  %p357_p3 = scmp.lt.s32.totalorder (!%p311_p2), %s1952_s15, 31  ;;  %v402_v4 = vld [vmem:[%s3428_s3 + $0x8] sm:$0xff] (!%p311_p2)  ;;  %v849_v10 = vld [vmem:[%s3430_s5 + $0x10] sm:$0xff] (!%p311_p2)  ;;  %vm1783_vm2 = vcmask (!%p311_p2), 392192  }
   0x7   : > { %v2250_v5 = vpack.c.bf16 (!%p311_p2), %v402_v4, %v401_v2  ;;  %v848_v6 = vld [vmem:[%s3430_s5 + $0x8] sm:$0xff] (!%p311_p2)  ;;  %v847_v8 = vld [vmem:[%s3430_s5] sm:$0xff] (!%p311_p2)  ;;  %v854_v12 = vld [vmem:[%s3430_s5 + $0x38] sm:$0xff] (!%p311_p2)  ;;  %s2444_s28 = smov (!%p311_p2), 48   ;;  %s2445_s29 = smov (!%p311_p2), 80   ;;  %vm1800_vm3 = vcmask (!%p311_p2), 523264  }
   0x8   : > { %2247 = vmatprep.subr.bf16.mxu0 (!%p311_p2), %v2246_v3  ;;  %v2258_v9 = vpack.c.bf16 (!%p311_p2), %v850_v7, %v848_v6  ;;  %v852_v11 = vld [vmem:[%s3430_s5 + $0x28] sm:$0xff] (!%p311_p2)  ;;  %v403_v13 = vld [vmem:[%s3428_s3 + $0x10] sm:$0xff] (!%p311_p2)  ;;  %v404_v14 = vld [vmem:[%s3428_s3 + $0x18] sm:$0xff] (!%p311_p2)  ;;  %v2542_v15 = vpack.c.bf16 (!%p311_p2), %v849_v10, %v847_v8  ;;  %s2446_s12 = smov (!%p311_p2), 64   ;;  %s2447_s13 = smov (!%p311_p2), 32   ;;  %vm1817_vm4 = vcmask (!%p311_p2), 654336  }
   0x9   : > { %2249 = vmatpush3.bf16.msra.mxu0 (!%p311_p2), %v2246_v3  ;;  %v2546_v16 = vpack.c.bf16 (!%p311_p2), %v854_v12, %v852_v11  ;;  %v851_v17 = vld [vmem:[%s3430_s5 + $0x20] sm:$0xff] (!%p311_p2)  ;;  %v853_v18 = vld [vmem:[%s3430_s5 + $0x30] sm:$0xff] (!%p311_p2)  ;;  %v856_v19 = vld [vmem:[%s3430_s5 + $0x48] sm:$0xff] (!%p311_p2)  ;;  %v2254_v24 = vpack.c.bf16 (!%p311_p2), %v404_v14, %v403_v13  ;;  %vm1834_vm5 = vcmask (!%p311_p2), 785408  }
   0xa   : > { %2251 = vmatprep.subr.bf16.mxu0 (!%p311_p2), %v2250_v5  ;;  %2326 = vmatprep.subr.bf16.mxu1 (!%p311_p2), %v2258_v9  ;;  %v858_v20 = vld [vmem:[%s3430_s5 + $0x58] sm:$0xff] (!%p311_p2)  ;;  %v2573_v25 = vpack.c.bf16 (!%p311_p2), %v853_v18, %v851_v17  ;;  %v855_v28 = vld [vmem:[%s3430_s5 + $0x40] sm:$0xff] (!%p311_p2)  ;;  %v857_v29 = vld [vmem:[%s3430_s5 + $0x50] sm:$0xff] (!%p311_p2) }
   0xb   : > { %2334 = vmatpush1.bf16.msra.mxu1 (!%p311_p2), %v2542_v15  ;;  %v2577_v27 = vpack.c.bf16 (!%p311_p2), %v858_v20, %v856_v19  ;;  %v860_v31 = vld [vmem:[%s3430_s5 + $0x68] sm:$0xff] (!%p311_p2)  ;;  %v862_v32 = vld [vmem:[%s3430_s5 + $0x78] sm:$0xff] (!%p311_p2)  ;;  %v2595_v33 = vpack.c.bf16 (!%p311_p2), %v857_v29, %v855_v28  ;;  %v859_v37 = vld [vmem:[%s3430_s5 + $0x60] sm:$0xff] (!%p311_p2) }
   0xc   : > { %2327 = vmatprep.subr.bf16.mxu1 (!%p311_p2), %v2546_v16  ;;  %v2599_v35 = vpack.c.bf16 (!%p311_p2), %v862_v32, %v860_v31  ;;  %v861_v38 = vld [vmem:[%s3430_s5 + $0x70] sm:$0xff] (!%p311_p2)  ;;  %v864_v41 = vld [vmem:[%s3430_s5 + $0x88] sm:$0xff] (!%p311_p2)  ;;  %v866_v42 = vld [vmem:[%s3430_s5 + $0x98] sm:$0xff] (!%p311_p2) }
   0xd   : > { %s3436_s15 = smov (!%p357_p3, %s1952_s15), 31  ;;  %v2613_v40 = vpack.c.bf16 %v861_v38, %v859_v37  ;;  %v2622_v44 = vpack.c.bf16 %v866_v42, %v864_v41  ;;  %v863_v45 = vld [vmem:[%s3430_s5 + $0x80] sm:$0xff]  ;;  %v865_v46 = vld [vmem:[%s3430_s5 + $0x90] sm:$0xff]  ;;  %v868_v47 = vld [vmem:[%s3430_s5 + $0xa8] sm:$0xff] }
   0xe   : > { %s2544_s17 = sshll.u32 %s3436_s15, 3  ;;  %v870_v48 = vld [vmem:[%s3430_s5 + $0xb8] sm:$0xff]  ;;  %v2276_v50 = vpack.c.bf16 %v865_v46, %v863_v45  ;;  %v867_v53 = vld [vmem:[%s3430_s5 + $0xa0] sm:$0xff]  ;;  %v869_v54 = vld [vmem:[%s3430_s5 + $0xb0] sm:$0xff] }
   0xf   : > { %s2555_s22 = scalar_lea.vmem %s3426_s1, %s2544_s17  ;;  %2335 = vmatpush1.bf16.msra.mxu1 %v2573_v25  ;;  %v2278_v52 = vpack.c.bf16 %v870_v48, %v868_v47  ;;  %v872_v55 = vld [vmem:[%s3430_s5 + $0xc8] sm:$0xff]  ;;  %v874_v56 = vld [vmem:[%s3430_s5 + $0xd8] sm:$0xff]  ;;  %v2280_v58 = vpack.c.bf16 %v869_v54, %v867_v53  ;;  %v871_v61 = vld [vmem:[%s3430_s5 + $0xc0] sm:$0xff]  ;;  %s2672_s10 = scalar_lea.vmem %s3425_s0, %s2544_s17 }
  0x10   : > { %v405_v21 = vld [vmem:[%s2555_s22] sm:$0xff]  ;;  %v406_v22 = vld [vmem:[%s2555_s22 + $0x8] sm:$0xff]  ;;  %v407_v23 = vld [vmem:[%s2555_s22 + $0x10] sm:$0xff]  ;;  %2328 = vmatprep.subr.bf16.mxu1 %v2577_v27  ;;  %v2282_v60 = vpack.c.bf16 %v874_v56, %v872_v55  ;;  %s2807_s11 = scalar_lea.vmem %s3427_s2, %s2544_s17  ;;  %s3266_s19 = scalar_lea.vmem %s3434_s9, %s2544_s17 }
  0x11   : > { %2106 = vmatprep.mubr.msk.f32.mxu0 %vm423_vm0, %v405_v21  ;;  %v408_v26 = vld [vmem:[%s2555_s22 + $0x18] sm:$0xff]  ;;  %v409_v30 = vld [vmem:[%s2555_s22 + $0x20] sm:$0xff]  ;;  %v410_v34 = vld [vmem:[%s2555_s22 + $0x28] sm:$0xff] }
  0x12   : > { %2107 = vmatmul.mubr.msk.f32.vlgmr.msra.gmra.mrb[0].mxu0 %vm423_vm0, %v406_v22  ;;  %v411_v36 = vld [vmem:[%s2555_s22 + $0x30] sm:$0xff]  ;;  %v412_v39 = vld [vmem:[%s2555_s22 + $0x38] sm:$0xff]  ;;  %v413_v43 = vld [vmem:[%s2555_s22 + $0x40] sm:$0xff] }
  0x13   : > { %2253 = vmatpush3.bf16.msra.mxu0 %v2250_v5  ;;  %2109 = vmatprep.mubr.msk.f32.mxu0 %vm423_vm0, %v407_v23  ;;  %v414_v49 = vld [vmem:[%s2555_s22 + $0x48] sm:$0xff]  ;;  %v415_v51 = vld [vmem:[%s2555_s22 + $0x50] sm:$0xff]  ;;  %v416_v57 = vld [vmem:[%s2555_s22 + $0x58] sm:$0xff] }
  0x14   : > { %2255 = vmatprep.subr.bf16.mxu0 %v2254_v24  ;;  %2336 = vmatpush1.bf16.msra.mxu1 %v2595_v33  ;;  %v417_v59 = vld [vmem:[%s2555_s22 + $0x60] sm:$0xff]  ;;  %v873_v62 = vld [vmem:[%s3430_s5 + $0xd0] sm:$0xff]  ;;  %v418_v63 = vld [vmem:[%s2555_s22 + $0x68] sm:$0xff] }
  0x15   : > { %2329 = vmatprep.subr.bf16.mxu1 %v2599_v35  ;;  %v2284_v0 = vpack.c.bf16 %v873_v62, %v871_v61  ;;  %v419_v1 = vld [vmem:[%s2555_s22 + $0x70] sm:$0xff]  ;;  %v420_v2 = vld [vmem:[%s2555_s22 + $0x78] sm:$0xff]  ;;  %v385_v3 = vld [vmem:[%s2672_s10] sm:$0xff] }
  0x16   : > { %2110 = vmatmul.mubr.msk.f32.gmra.mrb[2].mxu0 %vm423_vm0, %v408_v26  ;;  %v386_v4 = vld [vmem:[%s2672_s10 + $0x8] sm:$0xff]  ;;  %v387_v5 = vld [vmem:[%s2672_s10 + $0x10] sm:$0xff]  ;;  %v388_v6 = vld [vmem:[%s2672_s10 + $0x18] sm:$0xff] }
  0x17   : > { %2112 = vmatprep.mubr.msk.f32.mxu0 %vm423_vm0, %v409_v30  ;;  %2257 = vmatpush3.bf16.msra.mxu0 %v2254_v24  ;;  %v389_v7 = vld [vmem:[%s2672_s10 + $0x20] sm:$0xff]  ;;  %v390_v8 = vld [vmem:[%s2672_s10 + $0x28] sm:$0xff]  ;;  %v392_v10 = vld [vmem:[%s2672_s10 + $0x38] sm:$0xff] }
  0x18   : > { %2259 = vmatprep.subr.bf16.mxu0 %v2258_v9  ;;  %2337 = vmatpush1.bf16.msra.mxu1 %v2613_v40  ;;  %v391_v9 = vld [vmem:[%s2672_s10 + $0x30] sm:$0xff]  ;;  %v393_v11 = vld [vmem:[%s2672_s10 + $0x40] sm:$0xff]  ;;  %v394_v12 = vld [vmem:[%s2672_s10 + $0x48] sm:$0xff] }
  0x19   : > { %2330 = vmatprep.subr.bf16.mxu1 %v2622_v44  ;;  %v395_v13 = vld [vmem:[%s2672_s10 + $0x50] sm:$0xff]  ;;  %v396_v14 = vld [vmem:[%s2672_s10 + $0x58] sm:$0xff]  ;;  %v876_v19 = vld [vmem:[%s3430_s5 + $0xe8] sm:$0xff] }
  0x1a   : > { %2113 = vmatmul.mubr.msk.f32.gmra.mrb[4].mxu0 %vm423_vm0, %v410_v34  ;;  %v399_v17 = vld [vmem:[%s2672_s10 + $0x70] sm:$0xff]  ;;  %v400_v18 = vld [vmem:[%s2672_s10 + $0x78] sm:$0xff]  ;;  %v875_v22 = vld [vmem:[%s3430_s5 + $0xe0] sm:$0xff] }
  0x1b   : > { %2115 = vmatprep.mubr.msk.f32.mxu0 %vm423_vm0, %v411_v36  ;;  %v878_v20 = vld [vmem:[%s3430_s5 + $0xf8] sm:$0xff]  ;;  %v877_v23 = vld [vmem:[%s3430_s5 + $0xf0] sm:$0xff]  ;;  %v2735_v26 = vld [vmem:[%s3433_s8] ss:$0 sm:$0xff] }
  0x1c   : > { %2338 = vmatpush1.bf16.msra.mxu1 %v2276_v50  ;;  %v2286_v21 = vpack.c.bf16 %v878_v20, %v876_v19  ;;  %v2288_v24 = vpack.c.bf16 %v877_v23, %v875_v22 }
  0x1d   : > { %2331 = vmatprep.subr.bf16.mxu1 %v2278_v52 }
  0x1e   : > { %2116 = vmatmul.mubr.msk.f32.gmra.mrb[6].mxu0 %vm423_vm0, %v412_v39 }
  0x1f   : > { %2118 = vmatprep.mubr.msk.f32.mxu0 %vm423_vm0, %v413_v43 }
  0x20   : > { %2339 = vmatpush1.bf16.msra.mxu1 %v2280_v58 }
  0x21   : > { %2332 = vmatprep.subr.bf16.mxu1 %v2282_v60 }
  0x22   : > { %2119 = vmatmul.mubr.msk.f32.gmra.mrb[8].mxu0 %vm423_vm0, %v414_v49 }
  0x23   : > { %2121 = vmatprep.mubr.msk.f32.mxu0 %vm423_vm0, %v415_v51 }
  0x24   : > { %2340 = vmatpush1.bf16.msra.mxu1 %v2284_v0 }
  0x25   : > { %2333 = vmatprep.subr.bf16.mxu1 %v2286_v21 }
  0x26   : > { %2122 = vmatmul.mubr.msk.f32.gmra.mrb[10].mxu0 %vm423_vm0, %v416_v57 }
  0x27   : > { %2124 = vmatprep.mubr.msk.f32.mxu0 %vm423_vm0, %v417_v59 }
  0x28   : > { %2341 = vmatpush1.bf16.msra.mxu1 %v2288_v24 }
  0x2a   : > { %2125 = vmatmul.mubr.msk.f32.gmra.mrb[12].mxu0 %vm423_vm0, %v418_v63 }
  0x2b   : > { %2127 = vmatprep.mubr.msk.f32.mxu0 %vm423_vm0, %v419_v1 }
  0x2e   : > { %2128 = vmatmul.mubr.msk.f32.gmra.mrb[14].mxu0 %vm423_vm0, %v420_v2 }
  0x2f   : > { %2138 = vmatprep.mubr.msk.f32.mxu0 %vm617_vm1, %v385_v3 }
  0x32   : > { %2139 = vmatmul.mubr.msk.f32.vlgmr.msra.gmra.mrb[0].mxu0 %vm617_vm1, %v386_v4 }
  0x33   : > { %2141 = vmatprep.mubr.msk.f32.mxu0 %vm617_vm1, %v387_v5  ;;  %2261 = vmatpush1.bf16.msra.mxu0 %v2542_v15  ;;  %v397_v15 = vld [vmem:[%s2672_s10 + $0x60] sm:$0xff] }
  0x34   : > { %2263 = vmatprep.subr.bf16.mxu0 %v2546_v16  ;;  %v398_v16 = vld [vmem:[%s2672_s10 + $0x68] sm:$0xff] }
  0x36   : > { %2142 = vmatmul.mubr.msk.f32.gmra.mrb[2].mxu0 %vm617_vm1, %v388_v6 }
  0x37   : > { %2144 = vmatprep.mubr.msk.f32.mxu0 %vm617_vm1, %v389_v7  ;;  %2265 = vmatpush1.bf16.msra.mxu0 %v2573_v25  ;;  %v2443_v25 = vmov 0.0  }
  0x38   : > { %2267 = vmatprep.subr.bf16.mxu0 %v2577_v27  ;;  %972 = vmatprep.mubr.f32.mxu1 %v2443_v25 }
  0x3a   : > { %2145 = vmatmul.mubr.msk.f32.gmra.mrb[4].mxu0 %vm617_vm1, %v390_v8 }
  0x3b   : > { %2147 = vmatprep.mubr.msk.f32.mxu0 %vm617_vm1, %v391_v9  ;;  %2269 = vmatpush1.bf16.msra.mxu0 %v2595_v33 }
  0x3c   : > { %2271 = vmatprep.subr.bf16.mxu0 %v2599_v35 }
  0x3e   : > { %2148 = vmatmul.mubr.msk.f32.gmra.mrb[6].mxu0 %vm617_vm1, %v392_v10 }
  0x3f   : > { %2150 = vmatprep.mubr.msk.f32.mxu0 %vm617_vm1, %v393_v11  ;;  %2273 = vmatpush1.bf16.msra.mxu0 %v2613_v40  ;;  %v1147_v11 = vld [vmem:[%s3431_s6] sm:$0xff] }
  0x40   : > { %2275 = vmatprep.subr.bf16.mxu0 %v2622_v44 }
  0x42   : > { %2151 = vmatmul.mubr.msk.f32.gmra.mrb[8].mxu0 %vm617_vm1, %v394_v12  ;;  %v1148_v12 = vld [vmem:[%s3431_s6 + $0x8] sm:$0xff] }
  0x43   : > { %2153 = vmatprep.mubr.msk.f32.mxu0 %vm617_vm1, %v395_v13  ;;  %2277 = vmatpush1.bf16.msra.mxu0 %v2276_v50  ;;  %v2290_v13 = vpack.c.bf16 %v1148_v12, %v1147_v11 }
  0x44   : > { %2279 = vmatprep.subr.bf16.mxu0 %v2278_v52 }
  0x46   : > { %2154 = vmatmul.mubr.msk.f32.gmra.mrb[10].mxu0 %vm617_vm1, %v396_v14  ;;  %v880_v14 = vlaneseq }
  0x47   : > { %2156 = vmatprep.mubr.msk.f32.mxu0 %vm617_vm1, %v397_v15  ;;  %2281 = vmatpush1.bf16.msra.mxu0 %v2280_v58 }
  0x48   : > { %2283 = vmatprep.subr.bf16.mxu0 %v2282_v60  ;;  %v881_v15 = vshrl.u32 %v880_v14, 7 }
  0x4a   : > { %2157 = vmatmul.mubr.msk.f32.gmra.mrb[12].mxu0 %vm617_vm1, %v398_v16  ;;  %v882_v16 = vsub.s32 0, %v881_v15 }
  0x4b   : > { %2159 = vmatprep.mubr.msk.f32.mxu0 %vm617_vm1, %v399_v17  ;;  %2285 = vmatpush1.bf16.msra.mxu0 %v2284_v0  ;;  %v1960_v17 = vld [vmem:[%s3433_s8 + $0x1] ss:$4 sm:$0x3] }
  0x4c   : > { %2287 = vmatprep.subr.bf16.mxu0 %v2286_v21  ;;  %v2776_v19 = vrot.slane %v1960_v17, %v882_v16 }
  0x4e   : > { %2160 = vmatmul.mubr.msk.f32.gmra.mrb[14].mxu0 %vm617_vm1, %v400_v18  ;;  %v886_v18 = vsub.s32 1, %v881_v15 }
  0x4f   : > { %2289 = vmatpush1.bf16.msra.mxu0 %v2288_v24  ;;  %954 = vmatprep.mubr.f32.mxu0 %v2443_v25 }
  0x50   : > { %2291 = vmatprep.subr.bf16.mxu0 %v2290_v13  ;;  %v2778_v20 = vrot.slane %v1960_v17, %v886_v18  ;;  %v1103_v18 = vld [vmem:[%s2807_s11 + $0x20] sm:$0xff] }
 0x105   : > { %v2140_v27 = vpop.f32.mrb[0].mxu0 }
 0x106   : > { %v732_v28 = vpop.f32.mrb[1].mxu0  ;;  %v816_v30 = vadd.f32 %v2140_v27, %v2735_v26 }
 0x107   : > { %v815_v29 = vadd.f32 %v2735_v26, %v732_v28 }
 0x108   : > { %v832_v36 = vmax.f32 %v816_v30, 0.0 }
 0x109   : > { %v831_v31 = vmax.f32 %v815_v29, 0.0  ;;  %v2143_v32 = vpop.f32.mrb[2].mxu0 }
 0x10a   : > { %v818_v33 = vadd.f32 %v2143_v32, %v2735_v26  ;;  %v742_v34 = vpop.f32.mrb[3].mxu0 }
 0x10b   : > { %955 = vmatmul.mubr.f32.vlgmr.msra.gmra.mrb[16].mxu0 %v831_v31  ;;  %v817_v37 = vadd.f32 %v2735_v26, %v742_v34 }
 0x10c   : > { %v834_v35 = vmax.f32 %v818_v33, 0.0  ;;  %960 = vmatprep.mubr.f32.mxu0 %v2443_v25  ;;  %2293 = vmatpush3.bf16.msra.mxu0 %v2290_v13  ;;  %v1101_v13 = vld [vmem:[%s2807_s11 + $0x10] sm:$0xff] }
 0x10d   : > { %v2146_v38 = vpop.f32.mrb[4].mxu0  ;;  %v833_v41 = vmax.f32 %v817_v37, 0.0 }
 0x10e   : > { %v752_v39 = vpop.f32.mrb[5].mxu0  ;;  %973 = vmatmul.mubr.f32.vlgmr.msra.gmra.mrb[0].mxu1 %v834_v35  ;;  %v820_v42 = vadd.f32 %v2146_v38, %v2735_v26 }
 0x10f   : > { %v819_v40 = vadd.f32 %v2735_v26, %v752_v39  ;;  %961 = vmatmul.mubr.f32.gmra.mrb[18].mxu0 %v832_v36  ;;  %978 = vmatprep.mubr.f32.mxu1 %v2443_v25 }
 0x110   : > { %966 = vmatprep.mubr.f32.mxu0 %v2443_v25  ;;  %v836_v46 = vmax.f32 %v820_v42, 0.0 }
 0x111   : > { %v835_v43 = vmax.f32 %v819_v40, 0.0  ;;  %v2149_v44 = vpop.f32.mrb[6].mxu0 }
 0x112   : > { %v762_v45 = vpop.f32.mrb[7].mxu0  ;;  %v822_v50 = vadd.f32 %v2149_v44, %v2735_v26 }
 0x113   : > { %967 = vmatmul.mubr.f32.gmra.mrb[20].mxu0 %v833_v41  ;;  %979 = vmatmul.mubr.f32.gmra.mrb[2].mxu1 %v835_v43  ;;  %v821_v47 = vadd.f32 %v2735_v26, %v762_v45 }
 0x114   : > { %984 = vmatprep.mubr.f32.mxu1 %v2443_v25  ;;  %v838_v54 = vmax.f32 %v822_v50, 0.0 }
 0x115   : > { %v2152_v48 = vpop.f32.mrb[8].mxu0  ;;  %v837_v51 = vmax.f32 %v821_v47, 0.0 }
 0x116   : > { %v772_v49 = vpop.f32.mrb[9].mxu0  ;;  %v824_v58 = vadd.f32 %v2152_v48, %v2735_v26 }
 0x117   : > { %985 = vmatmul.mubr.f32.gmra.mrb[4].mxu1 %v836_v46  ;;  %v823_v55 = vadd.f32 %v2735_v26, %v772_v49 }
 0x118   : > { %990 = vmatprep.mubr.f32.mxu1 %v2443_v25  ;;  %v840_v62 = vmax.f32 %v824_v58, 0.0 }
 0x119   : > { %v2155_v52 = vpop.f32.mrb[10].mxu0  ;;  %v839_v59 = vmax.f32 %v823_v55, 0.0 }
 0x11a   : > { %v782_v53 = vpop.f32.mrb[11].mxu0  ;;  %v826_v0 = vadd.f32 %v2155_v52, %v2735_v26 }
 0x11b   : > { %991 = vmatmul.mubr.f32.gmra.mrb[6].mxu1 %v837_v51  ;;  %v825_v63 = vadd.f32 %v2735_v26, %v782_v53 }
 0x11c   : > { %996 = vmatprep.mubr.f32.mxu1 %v2443_v25  ;;  %v842_v2 = vmax.f32 %v826_v0, 0.0 }
 0x11d   : > { %v2158_v56 = vpop.f32.mrb[12].mxu0  ;;  %v841_v1 = vmax.f32 %v825_v63, 0.0  ;;  %v1100_v63 = vld [vmem:[%s2807_s11 + $0x8] sm:$0xff] }
 0x11e   : > { %v792_v57 = vpop.f32.mrb[13].mxu0  ;;  %v828_v4 = vadd.f32 %v2158_v56, %v2735_v26  ;;  %v1099_v56 = vld [vmem:[%s2807_s11] sm:$0xff] }
 0x11f   : > { %997 = vmatmul.mubr.f32.gmra.mrb[8].mxu1 %v838_v54  ;;  %v827_v3 = vadd.f32 %v2735_v26, %v792_v57 }
 0x120   : > { %1002 = vmatprep.mubr.f32.mxu1 %v2443_v25  ;;  %v844_v6 = vmax.f32 %v828_v4, 0.0 }
 0x121   : > { %v2161_v60 = vpop.f32.mrb[14].mxu0  ;;  %v843_v5 = vmax.f32 %v827_v3, 0.0 }
 0x122   : > { %v802_v61 = vpop.f32.mrb[15].mxu0  ;;  %v830_v8 = vadd.f32 %v2161_v60, %v2735_v26 }
 0x123   : > { %1003 = vmatmul.mubr.f32.gmra.mrb[10].mxu1 %v839_v59  ;;  %v829_v7 = vadd.f32 %v2735_v26, %v802_v61 }
 0x124   : > { %1008 = vmatprep.mubr.f32.mxu1 %v2443_v25  ;;  %v846_v10 = vmax.f32 %v830_v8, 0.0 }
 0x125   : > { %v845_v9 = vmax.f32 %v829_v7, 0.0 }
 0x127   : > { %1009 = vmatmul.mubr.f32.gmra.mrb[12].mxu1 %v840_v62  ;;  %v1102_v62 = vld [vmem:[%s2807_s11 + $0x18] sm:$0xff] }
 0x128   : > { %1014 = vmatprep.mubr.f32.mxu1 %v2443_v25 }
 0x12b   : > { %1015 = vmatmul.mubr.f32.gmra.mrb[14].mxu1 %v841_v1 }
 0x12c   : > { %1020 = vmatprep.mubr.f32.mxu1 %v2443_v25 }
 0x12f   : > { %1021 = vmatmul.mubr.f32.gmra.mrb[16].mxu1 %v842_v2 }
 0x130   : > { %1026 = vmatprep.mubr.f32.mxu1 %v2443_v25 }
 0x133   : > { %1027 = vmatmul.mubr.f32.gmra.mrb[18].mxu1 %v843_v5 }
 0x134   : > { %1032 = vmatprep.mubr.f32.mxu1 %v2443_v25 }
 0x137   : > { %1033 = vmatmul.mubr.f32.gmra.mrb[20].mxu1 %v844_v6 }
 0x138   : > { %1038 = vmatprep.mubr.f32.mxu1 %v2443_v25 }
 0x13b   : > { %1039 = vmatmul.mubr.f32.gmra.mrb[22].mxu1 %v845_v9 }
 0x13c   : > { %1044 = vmatprep.mubr.f32.mxu1 %v2443_v25 }
 0x13f   : > { %1045 = vmatmul.mubr.f32.gmra.mrb[24].mxu1 %v846_v10 }
 0x1de   : > { %v956_v21 = vpop.f32.mrb[16].mxu0 }
 0x1df   : > { %v2781_v22 = vadd.f32 %v956_v21, %v2776_v19  ;;  %v958_v23 = vpop.f32.mrb[17].mxu0 }
 0x1e0   : > { %v959_v24 = vadd.f32 %v958_v23, %v2778_v20 }
 0x1e1   : > { %v974_v25 = vpop.f32.mrb[0].mxu1  ;;  %1591 = vrot.lane.b32.xlu0 %v2781_v22, %s2444_s28 }
 0x1e2   : > { %v1051_v26 = vmul.f32 0.5, %v959_v24  ;;  %v2787_v27 = vadd.f32 %v974_v25, %v2776_v19  ;;  %v962_v28 = vpop.f32.mrb[18].mxu0  ;;  %v976_v29 = vpop.f32.mrb[1].mxu1 }
 0x1e3   : > { %v977_v30 = vadd.f32 %v976_v29, %v2778_v20  ;;  %v964_v31 = vpop.f32.mrb[19].mxu0  ;;  %v963_v35 = vadd.f32 %v962_v28, %v2776_v19  ;;  %v1104_v29 = vld [vmem:[%s2807_s11 + $0x28] sm:$0xff] }
 0x1e4   : > { %v1067_v32 = vmul.f32 1.442695, %v1051_v26  ;;  %v965_v33 = vadd.f32 %v964_v31, %v2778_v20  ;;  %1597 = vrot.lane.b32.xlu1 %v2787_v27, %s2444_s28 }
 0x1e5   : > { %v1054_v34 = vmul.f32 0.5, %v977_v30  ;;  %1719 = vrot.lane.b32.xlu0 %v959_v24, %s2445_s29 }
 0x1e6   : > { %2371 = vpow2.f32 %v1067_v32  ;;  %v1052_v36 = vmul.f32 0.5, %v965_v33  ;;  %v968_v37 = vpop.f32.mrb[20].mxu0  ;;  %v980_v38 = vpop.f32.mrb[2].mxu1 }
 0x1e7   : > { %v1073_v39 = vmul.f32 1.442695, %v1054_v34  ;;  %v2796_v40 = vadd.f32 %v968_v37, %v2776_v19  ;;  %v970_v41 = vpop.f32.mrb[21].mxu0  ;;  %v982_v42 = vpop.f32.mrb[3].mxu1  ;;  %v2810_v49 = vadd.f32 %v980_v38, %v2776_v19 }
 0x1e8   : > { %v1069_v43 = vmul.f32 1.442695, %v1052_v36  ;;  %v971_v44 = vadd.f32 %v970_v41, %v2778_v20  ;;  %v983_v45 = vadd.f32 %v982_v42, %v2778_v20  ;;  %1593 = vrot.lane.b32.xlu1 %v963_v35, %s2444_s28 }
 0x1e9   : > { %2373 = vpow2.f32 %v1073_v39  ;;  %1595 = vrot.lane.b32.xlu0 %v2796_v40, %s2444_s28 }
 0x1ea   : > { %2375 = vpow2.f32 %v1069_v43  ;;  %v1053_v46 = vmul.f32 0.5, %v971_v44  ;;  %v1055_v47 = vmul.f32 0.5, %v983_v45  ;;  %v986_v48 = vpop.f32.mrb[4].mxu1 }
 0x1eb   : > { %v988_v50 = vpop.f32.mrb[5].mxu1  ;;  %v987_v0 = vadd.f32 %v986_v48, %v2776_v19 }
 0x1ec   : > { %v1071_v51 = vmul.f32 1.442695, %v1053_v46  ;;  %v1075_v52 = vmul.f32 1.442695, %v1055_v47  ;;  %v989_v53 = vadd.f32 %v988_v50, %v2778_v20  ;;  %1725 = vrot.lane.b32.xlu1 %v977_v30, %s2445_s29 }
 0x1ed   : > { %1599 = vrot.lane.b32.xlu0 %v2810_v49, %s2444_s28 }
 0x1ee   : > { %2377 = vpow2.f32 %v1071_v51  ;;  %v1056_v54 = vmul.f32 0.5, %v989_v53  ;;  %v992_v55 = vpop.f32.mrb[6].mxu1 }
 0x1ef   : > { %2379 = vpow2.f32 %v1075_v52  ;;  %v994_v57 = vpop.f32.mrb[7].mxu1  ;;  %v993_v16 = vadd.f32 %v992_v55, %v2776_v19 }
 0x1f0   : > { %v2372_v58 = vpop.eup %2371  ;;  %v1077_v59 = vmul.f32 1.442695, %v1056_v54  ;;  %v2818_v60 = vadd.f32 %v994_v57, %v2778_v20  ;;  %1721 = vrot.lane.b32.xlu1 %v965_v33, %s2445_s29 }
 0x1f1   : > { %1723 = vrot.lane.b32.xlu0 %v971_v44, %s2445_s29  ;;  %v1115_v61 = vmul.f32 %v2372_v58, %v1099_v56 }
 0x1f2   : > { %2381 = vpow2.f32 %v1077_v59  ;;  %v1057_v1 = vmul.f32 0.5, %v2818_v60  ;;  %v998_v2 = vpop.f32.mrb[8].mxu1 }
 0x1f3   : > { %v2374_v3 = vpop.eup %2373  ;;  %v1000_v4 = vpop.f32.mrb[9].mxu1  ;;  %v2827_v5 = vadd.f32 %v1115_v61, %v2781_v22  ;;  %v999_v37 = vadd.f32 %v998_v2, %v2776_v19 }
 0x1f4   : > { %v2829_v6 = vpop.eup %2375  ;;  %v1079_v7 = vmul.f32 1.442695, %v1057_v1  ;;  %v2832_v8 = vadd.f32 %v1000_v4, %v2778_v20  ;;  %1601 = vrot.lane.b32.xlu1 %v987_v0, %s2444_s28  ;;  %v1118_v9 = vmul.f32 %v2374_v3, %v1102_v62  ;;  %v1108_v4 = vld [vmem:[%s2807_s11 + $0x48] sm:$0xff] }
 0x1f5   : > { %v1116_v10 = vmul.f32 %v2829_v6, %v1100_v63  ;;  %1727 = vrot.lane.b32.xlu0 %v983_v45, %s2445_s29  ;;  %2166 = vmatprep.mubr.msk.f32.mxu0 %vm423_vm0, %v2827_v5 }
 0x1f6   : > { %2383 = vpow2.f32 %v1079_v7  ;;  %v1058_v11 = vmul.f32 0.5, %v2832_v8  ;;  %v2840_v12 = vpop.f32.mrb[10].mxu1  ;;  %v2844_v14 = vadd.f32 %v1118_v9, %v2787_v27 }
 0x1f7   : > { %v2846_v15 = vadd.f32 %v1116_v10, %v963_v35  ;;  %v1006_v17 = vpop.f32.mrb[11].mxu1 }
 0x1f8   : > { %v2850_v21 = vpop.eup %2377  ;;  %v1081_v22 = vmul.f32 1.442695, %v1058_v11  ;;  %v2853_v23 = vadd.f32 %v1006_v17, %v2778_v20  ;;  %1729 = vrot.lane.b32.xlu1 %v989_v53, %s2445_s29 }
 0x1f9   : > { %v2856_v24 = vpop.eup %2379  ;;  %1603 = vrot.lane.b32.xlu0 %v993_v16, %s2444_s28  ;;  %2167 = vmatmul.mubr.msk.f32.vlgmr.msra.gmra.mrb[22].mxu0 %vm423_vm0, %v2846_v15  ;;  %v1117_v25 = vmul.f32 %v2850_v21, %v1101_v13 }
 0x1fa   : > { %2385 = vpow2.f32 %v1081_v22  ;;  %v1059_v26 = vmul.f32 0.5, %v2853_v23  ;;  %v2863_v27 = vpop.f32.mrb[12].mxu1  ;;  %v1119_v28 = vmul.f32 %v2856_v24, %v1103_v18 }
 0x1fb   : > { %v1012_v30 = vpop.f32.mrb[13].mxu1  ;;  %v2868_v31 = vadd.f32 %v1117_v25, %v2796_v40  ;;  %v1105_v40 = vld [vmem:[%s2807_s11 + $0x30] sm:$0xff]  ;;  %v1011_v10 = vadd.f32 %v2863_v27, %v2776_v19 }
 0x1fc   : > { %v2870_v32 = vpop.eup %2381  ;;  %v1083_v33 = vmul.f32 1.442695, %v1059_v26  ;;  %v2873_v34 = vadd.f32 %v1012_v30, %v2778_v20  ;;  %1661 = vrot.lane.b32.xlu1 %v2374_v3, %s2446_s12  ;;  %v2877_v35 = vadd.f32 %v1119_v28, %v2810_v49  ;;  %v1106_v49 = vld [vmem:[%s2807_s11 + $0x38] sm:$0xff] }
 0x1fd   : > { %1655 = vrot.lane.b32.xlu0 %v2372_v58, %s2446_s12  ;;  %2169 = vmatprep.mubr.msk.f32.mxu0 %vm423_vm0, %v2868_v31  ;;  %v1120_v36 = vmul.f32 %v2870_v32, %v1104_v29  ;;  %v1107_v58 = vld [vmem:[%s2807_s11 + $0x40] sm:$0xff]  ;;  %v1110_v30 = vld [vmem:[%s2807_s11 + $0x58] sm:$0xff] }
 0x1fe   : > { %2387 = vpow2.f32 %v1083_v33  ;;  %v1060_v38 = vmul.f32 0.5, %v2873_v34  ;;  %v2885_v39 = vpop.f32.mrb[14].mxu1  ;;  %2170 = vmatmul.mubr.msk.f32.gmra.mrb[24].mxu0 %vm423_vm0, %v2844_v14 }
 0x1ff   : > { %v1018_v41 = vpop.f32.mrb[15].mxu1  ;;  %2172 = vmatprep.mubr.msk.f32.mxu0 %vm423_vm0, %v2877_v35  ;;  %v2892_v42 = vadd.f32 %v1120_v36, %v987_v0  ;;  %v1005_v0 = vadd.f32 %v2840_v12, %v2776_v19  ;;  %v1017_v26 = vadd.f32 %v2885_v39, %v2776_v19 }
 0x200   : > { %v2894_v43 = vpop.eup %2383  ;;  %v1085_v44 = vmul.f32 1.442695, %v1060_v38  ;;  %v2897_v45 = vadd.f32 %v1018_v41, %v2778_v20  ;;  %1605 = vrot.lane.b32.xlu1 %v999_v37, %s2444_s28 }
 0x201   : > { %1731 = vrot.lane.b32.xlu0 %v2818_v60, %s2445_s29  ;;  %v1121_v46 = vmul.f32 %v2894_v43, %v1105_v40 }
 0x202   : > { %2389 = vpow2.f32 %v1085_v44  ;;  %v1061_v47 = vmul.f32 0.5, %v2897_v45  ;;  %v2904_v48 = vpop.f32.mrb[16].mxu1  ;;  %2173 = vmatmul.mubr.msk.f32.gmra.mrb[26].mxu0 %vm423_vm0, %v2892_v42  ;;  %v1111_v44 = vld [vmem:[%s2807_s11 + $0x60] sm:$0xff] }
 0x203   : > { %v1024_v50 = vpop.f32.mrb[17].mxu1  ;;  %v2909_v51 = vadd.f32 %v1121_v46, %v993_v16  ;;  %v1023_v39 = vadd.f32 %v2904_v48, %v2776_v19 }
 0x204   : > { %v2911_v52 = vpop.eup %2385  ;;  %v1087_v53 = vmul.f32 1.442695, %v1061_v47  ;;  %v2914_v54 = vadd.f32 %v1024_v50, %v2778_v20  ;;  %1657 = vrot.lane.b32.xlu1 %v2829_v6, %s2446_s12 }
 0x205   : > { %1527 = vrot.lane.b32.xlu0 %v2827_v5, %s2447_s13  ;;  %2175 = vmatprep.mubr.msk.f32.mxu0 %vm423_vm0, %v2909_v51  ;;  %v1122_v55 = vmul.f32 %v2911_v52, %v1106_v49  ;;  %v1112_v49 = vld [vmem:[%s2807_s11 + $0x68] sm:$0xff] }
 0x206   : > { %2391 = vpow2.f32 %v1087_v53  ;;  %v1062_v56 = vmul.f32 0.5, %v2914_v54  ;;  %v2924_v57 = vpop.f32.mrb[18].mxu1 }
 0x207   : > { %v1030_v59 = vpop.f32.mrb[19].mxu1  ;;  %v2927_v60 = vadd.f32 %v1122_v55, %v999_v37  ;;  %v1113_v55 = vld [vmem:[%s2807_s11 + $0x70] sm:$0xff] }
 0x208   : > { %v2929_v61 = vpop.eup %2387  ;;  %v1089_v62 = vmul.f32 1.442695, %v1062_v56  ;;  %v2932_v63 = vadd.f32 %v1030_v59, %v2778_v20  ;;  %1733 = vrot.lane.b32.xlu1 %v2832_v8, %s2445_s29 }
 0x209   : > { %1529 = vrot.lane.b32.xlu0 %v2846_v15, %s2447_s13  ;;  %2176 = vmatmul.mubr.msk.f32.gmra.mrb[28].mxu0 %vm423_vm0, %v2927_v60  ;;  %v1123_v1 = vmul.f32 %v2929_v61, %v1107_v58  ;;  %v1109_v15 = vld [vmem:[%s2807_s11 + $0x50] sm:$0xff] }
 0x20a   : > { %2393 = vpow2.f32 %v1089_v62  ;;  %v1063_v2 = vmul.f32 0.5, %v2932_v63  ;;  %v1034_v3 = vpop.f32.mrb[20].mxu1  ;;  %v1367_v62 = vld [vmem:[%s3432_s7 + $0x28] sm:$0xff] }
 0x20b   : > { %v1036_v5 = vpop.f32.mrb[21].mxu1  ;;  %v2945_v6 = vadd.f32 %v1123_v1, %v1005_v0  ;;  %v1369_v1 = vld [vmem:[%s3432_s7 + $0x38] sm:$0xff] }
 0x20c   : > { %v2947_v7 = vpop.eup %2389  ;;  %v1091_v8 = vmul.f32 1.442695, %v1063_v2  ;;  %v2950_v9 = vadd.f32 %v1036_v5, %v2778_v20  ;;  %1533 = vrot.lane.b32.xlu1 %v2844_v14, %s2447_s13 }
 0x20d   : > { %1607 = vrot.lane.b32.xlu0 %v1005_v0, %s2444_s28  ;;  %2178 = vmatprep.mubr.msk.f32.mxu0 %vm423_vm0, %v2945_v6  ;;  %v1124_v11 = vmul.f32 %v2947_v7, %v1108_v4  ;;  %v1368_v0 = vld [vmem:[%s3432_s7 + $0x30] sm:$0xff]  ;;  %v1371_v4 = vld [vmem:[%s3432_s7 + $0x48] sm:$0xff] }
 0x20e   : > { %2395 = vpow2.f32 %v1091_v8  ;;  %v1064_v12 = vmul.f32 0.5, %v2950_v9  ;;  %v1040_v13 = vpop.f32.mrb[22].mxu1  ;;  %v2306_v2 = vpack.c.bf16 %v1369_v1, %v1368_v0 }
 0x20f   : > { %v2963_v16 = vadd.f32 %v1040_v13, %v2776_v19  ;;  %v1042_v14 = vpop.f32.mrb[23].mxu1  ;;  %v2965_v17 = vadd.f32 %v1124_v11, %v1011_v10  ;;  %v1377_v13 = vld [vmem:[%s3432_s7 + $0x78] sm:$0xff] }
 0x210   : > { %v2967_v18 = vpop.eup %2391  ;;  %v1093_v22 = vmul.f32 1.442695, %v1064_v12  ;;  %v2970_v25 = vadd.f32 %v1042_v14, %v2778_v20  ;;  %1531 = vrot.lane.b32.xlu1 %v2868_v31, %s2447_s13  ;;  %v1376_v12 = vld [vmem:[%s3432_s7 + $0x70] sm:$0xff] }
 0x211   : > { %1659 = vrot.lane.b32.xlu0 %v2850_v21, %s2446_s12  ;;  %2179 = vmatmul.mubr.msk.f32.gmra.mrb[30].mxu0 %vm423_vm0, %v2965_v17  ;;  %v1125_v27 = vmul.f32 %v2967_v18, %v1109_v15  ;;  %v2322_v15 = vpack.c.bf16 %v1377_v13, %v1376_v12 }
 0x212   : > { %2397 = vpow2.f32 %v1093_v22  ;;  %v1065_v28 = vmul.f32 0.5, %v2970_v25  ;;  %v1046_v29 = vpop.f32.mrb[24].mxu1 }
 0x213   : > { %v2984_v33 = vadd.f32 %v1046_v29, %v2776_v19  ;;  %v1048_v31 = vpop.f32.mrb[25].mxu1  ;;  %v2986_v36 = vadd.f32 %v1125_v27, %v1017_v26 }
 0x214   : > { %v2988_v37 = vpop.eup %2393  ;;  %v1095_v21 = vmul.f32 1.442695, %v1065_v28  ;;  %v2991_v38 = vadd.f32 %v1048_v31, %v2778_v20  ;;  %1609 = vrot.lane.b32.xlu1 %v1011_v10, %s2444_s28  ;;  %v1375_v10 = vld [vmem:[%s3432_s7 + $0x68] sm:$0xff] }
 0x215   : > { %1663 = vrot.lane.b32.xlu0 %v2856_v24, %s2446_s12  ;;  %2181 = vmatprep.mubr.msk.f32.mxu0 %vm423_vm0, %v2986_v36  ;;  %v1126_v40 = vmul.f32 %v2988_v37, %v1110_v30  ;;  %v1029_v24 = vadd.f32 %v2924_v57, %v2776_v19 }
 0x216   : > { %2399 = vpow2.f32 %v1095_v21  ;;  %v1066_v41 = vmul.f32 0.5, %v2991_v38 }
 0x217   : > { %v3003_v20 = vadd.f32 %v1126_v40, %v1023_v39 }
 0x218   : > { %v3005_v46 = vpop.eup %2395  ;;  %v1097_v47 = vmul.f32 1.442695, %v1066_v41  ;;  %1665 = vrot.lane.b32.xlu1 %v2870_v32, %s2446_s12  ;;  %v1035_v32 = vadd.f32 %v1034_v3, %v2776_v19  ;;  %v1370_v3 = vld [vmem:[%s3432_s7 + $0x40] sm:$0xff] }
 0x219   : > { %1735 = vrot.lane.b32.xlu0 %v2853_v23, %s2445_s29  ;;  %2182 = vmatmul.mubr.msk.f32.gmra.mrb[32].mxu0 %vm423_vm0, %v3003_v20  ;;  %v1127_v48 = vmul.f32 %v3005_v46, %v1111_v44  ;;  %v2310_v5 = vpack.c.bf16 %v1371_v4, %v1370_v3 }
 0x21a   : > { %2401 = vpow2.f32 %v1097_v47 }
 0x21b   : > { %v3017_v50 = vadd.f32 %v1127_v48, %v1029_v24 }
 0x21c   : > { %v3019_v53 = vpop.eup %2397  ;;  %1737 = vrot.lane.b32.xlu1 %v2873_v34, %s2445_s29  ;;  %v1114_v34 = vld [vmem:[%s2807_s11 + $0x78] sm:$0xff] }
 0x21d   : > { %1535 = vrot.lane.b32.xlu0 %v2877_v35, %s2447_s13  ;;  %2184 = vmatprep.mubr.msk.f32.mxu0 %vm423_vm0, %v3017_v50  ;;  %v1128_v23 = vmul.f32 %v3019_v53, %v1112_v49 }
 0x21f   : > { %v3030_v56 = vadd.f32 %v1128_v23, %v1035_v32 }
 0x220   : > { %v3032_v57 = vpop.eup %2399  ;;  %1537 = vrot.lane.b32.xlu1 %v2892_v42, %s2447_s13 }
 0x221   : > { %1611 = vrot.lane.b32.xlu0 %v1017_v26, %s2444_s28  ;;  %2185 = vmatmul.mubr.msk.f32.gmra.mrb[34].mxu0 %vm423_vm0, %v3030_v56  ;;  %v1129_v19 = vmul.f32 %v3032_v57, %v1113_v55 }
 0x223   : > { %v3042_v35 = vadd.f32 %v1129_v19, %v2963_v16 }
 0x224   : > { %v3044_v58 = vpop.eup %2401  ;;  %1613 = vrot.lane.b32.xlu1 %v1023_v39, %s2444_s28 }
 0x225   : > { %1667 = vrot.lane.b32.xlu0 %v2894_v43, %s2446_s12  ;;  %2187 = vmatprep.mubr.msk.f32.mxu0 %vm423_vm0, %v3042_v35  ;;  %v1130_v42 = vmul.f32 %v3044_v58, %v1114_v34  ;;  %v1362_v43 = vld [vmem:[%s3432_s7] sm:$0xff] }
 0x227   : > { %v3053_v59 = vadd.f32 %v1130_v42, %v2984_v33 }
 0x228   : > { %1669 = vrot.lane.b32.xlu1 %v2911_v52, %s2446_s12  ;;  %v1364_v52 = vld [vmem:[%s3432_s7 + $0x10] sm:$0xff] }
 0x229   : > { %1739 = vrot.lane.b32.xlu0 %v2897_v45, %s2445_s29  ;;  %2188 = vmatmul.mubr.msk.f32.gmra.mrb[36].mxu0 %vm423_vm0, %v3053_v59  ;;  %v1363_v45 = vld [vmem:[%s3432_s7 + $0x8] sm:$0xff] }
 0x22c   : > { %1741 = vrot.lane.b32.xlu1 %v2914_v54, %s2445_s29  ;;  %v1365_v54 = vld [vmem:[%s3432_s7 + $0x18] sm:$0xff] }
 0x22d   : > { %1539 = vrot.lane.b32.xlu0 %v2909_v51, %s2447_s13  ;;  %v2294_v51 = vpack.c.bf16 %v1363_v45, %v1362_v43 }
 0x22f   : > { %2295 = vmatprep.subr.bf16.mxu1 %v2294_v51 }
 0x230   : > { %1541 = vrot.lane.b32.xlu1 %v2927_v60, %s2447_s13  ;;  %2297 = vmatpush3.bf16.msra.mxu1 %v2294_v51  ;;  %v2298_v60 = vpack.c.bf16 %v1365_v54, %v1364_v52 }
 0x231   : > { %1615 = vrot.lane.b32.xlu0 %v1029_v24, %s2444_s28 }
 0x232   : > { %2299 = vmatprep.subr.bf16.mxu1 %v2298_v60 }
 0x234   : > { %1617 = vrot.lane.b32.xlu1 %v1035_v32, %s2444_s28  ;;  %2301 = vmatpush3.bf16.msra.mxu1 %v2298_v60 }
 0x235   : > { %1671 = vrot.lane.b32.xlu0 %v2929_v61, %s2446_s12  ;;  %v1366_v61 = vld [vmem:[%s3432_s7 + $0x20] sm:$0xff] }
 0x238   : > { %1673 = vrot.lane.b32.xlu1 %v2947_v7, %s2446_s12  ;;  %v1373_v7 = vld [vmem:[%s3432_s7 + $0x58] sm:$0xff] }
 0x239   : > { %1743 = vrot.lane.b32.xlu0 %v2932_v63, %s2445_s29  ;;  %v2302_v63 = vpack.c.bf16 %v1367_v62, %v1366_v61 }
 0x23b   : > { %2303 = vmatprep.subr.bf16.mxu1 %v2302_v63 }
 0x23c   : > { %1745 = vrot.lane.b32.xlu1 %v2950_v9, %s2445_s29  ;;  %2305 = vmatpush3.bf16.msra.mxu1 %v2302_v63  ;;  %v1374_v9 = vld [vmem:[%s3432_s7 + $0x60] sm:$0xff] }
 0x23d   : > { %1543 = vrot.lane.b32.xlu0 %v2945_v6, %s2447_s13  ;;  %2307 = vmatprep.subr.bf16.mxu1 %v2306_v2  ;;  %v1372_v6 = vld [vmem:[%s3432_s7 + $0x50] sm:$0xff]  ;;  %v2318_v11 = vpack.c.bf16 %v1375_v10, %v1374_v9 }
 0x23e   : > { %v2314_v8 = vpack.c.bf16 %v1373_v7, %v1372_v6 }
 0x240   : > { %1545 = vrot.lane.b32.xlu1 %v2965_v17, %s2447_s13  ;;  %2309 = vmatpush3.bf16.msra.mxu1 %v2306_v2 }
 0x241   : > { %1619 = vrot.lane.b32.xlu0 %v2963_v16, %s2444_s28  ;;  %2311 = vmatprep.subr.bf16.mxu1 %v2310_v5  ;;  %v3164_v16 = vld [vmem:[%s3433_s8 + $0x2] ss:$0 sm:$0xff] }
 0x244   : > { %1621 = vrot.lane.b32.xlu1 %v2984_v33, %s2444_s28  ;;  %2313 = vmatpush3.bf16.msra.mxu1 %v2310_v5 }
 0x245   : > { %1675 = vrot.lane.b32.xlu0 %v2967_v18, %s2446_s12  ;;  %2315 = vmatprep.subr.bf16.mxu1 %v2314_v8 }
 0x248   : > { %1677 = vrot.lane.b32.xlu1 %v2988_v37, %s2446_s12  ;;  %2317 = vmatpush3.bf16.msra.mxu1 %v2314_v8 }
 0x249   : > { %1547 = vrot.lane.b32.xlu0 %v2986_v36, %s2447_s13  ;;  %2319 = vmatprep.subr.bf16.mxu1 %v2318_v11 }
 0x24c   : > { %1549 = vrot.lane.b32.xlu1 %v3003_v20, %s2447_s13  ;;  %2321 = vmatpush3.bf16.msra.mxu1 %v2318_v11 }
 0x24d   : > { %1679 = vrot.lane.b32.xlu0 %v3005_v46, %s2446_s12  ;;  %2323 = vmatprep.subr.bf16.mxu1 %v2322_v15 }
 0x250   : > { %1681 = vrot.lane.b32.xlu1 %v3019_v53, %s2446_s12  ;;  %2325 = vmatpush3.bf16.msra.mxu1 %v2322_v15 }
 0x251   : > { %1551 = vrot.lane.b32.xlu0 %v3017_v50, %s2447_s13 }
 0x253   : > { %v1592_v1 = vpop.permute.xlu0 %1591 }
 0x254   : > { %1553 = vrot.lane.b32.xlu1 %v3030_v56, %s2447_s13 }
 0x255   : > { %1683 = vrot.lane.b32.xlu0 %v3032_v57, %s2446_s12 }
 0x256   : > { %v3182_v0 = vpop.permute.xlu1 %1597 }
 0x257   : > { %v3184_v3 = vpop.permute.xlu0 %1719 }
 0x258   : > { %1685 = vrot.lane.b32.xlu1 %v3044_v58, %s2446_s12 }
 0x259   : > { %1555 = vrot.lane.b32.xlu0 %v3042_v35, %s2447_s13 }
 0x25a   : > { %v1594_v2 = vpop.permute.xlu1 %1593 }
 0x25b   : > { %v3188_v5 = vpop.permute.xlu0 %1595 }
 0x25c   : > { %1557 = vrot.lane.b32.xlu1 %v3053_v59, %s2447_s13 }
 0x25d   : > { %1747 = vrot.lane.b32.xlu0 %v2970_v25, %s2445_s29 }
 0x25e   : > { %v3186_v4 = vpop.permute.xlu1 %1725 }
 0x25f   : > { %v3190_v7 = vpop.permute.xlu0 %1599 }
 0x260   : > { %1749 = vrot.lane.b32.xlu1 %v2991_v38, %s2445_s29 }
 0x262   : > { %v1722_v6 = vpop.permute.xlu1 %1721 }
 0x263   : > { %v3194_v9 = vpop.permute.xlu0 %1723 }
 0x266   : > { %v3192_v8 = vpop.permute.xlu1 %1601 }
 0x267   : > { %v3198_v11 = vpop.permute.xlu0 %1727 }
 0x26a   : > { %v3196_v10 = vpop.permute.xlu1 %1729 }
 0x26b   : > { %v3202_v13 = vpop.permute.xlu0 %1603 }
 0x26e   : > { %v3200_v12 = vpop.permute.xlu1 %1661 }
 0x272   : > { %v3204_v15 = vpop.permute.xlu1 %1605 }
 0x2cc   : > { %v2168_v14 = vpop.f32.mrb[22].mxu0 }
 0x2cd   : > { %v1273_v17 = vadd.f32 %v2168_v14, %v3164_v16  ;;  %v1267_v18 = vpop.f32.mrb[23].mxu0  ;;  %v1658_v14 = vpop.permute.xlu1 %1657 }
 0x2ce   : > { %v1268_v22 = vadd.f32 %v3164_v16, %v1267_v18 }
 0x2d0   : > { %2403 = vtanh.f32 %v1268_v22 }
 0x2d1   : > { %2405 = vtanh.f32 %v1273_v17  ;;  %v2171_v26 = vpop.f32.mrb[24].mxu0  ;;  %v3208_v18 = vpop.permute.xlu1 %1733 }
 0x2d2   : > { %v1283_v27 = vadd.f32 %v2171_v26, %v3164_v16  ;;  %v1277_v25 = vpop.f32.mrb[25].mxu0 }
 0x2d3   : > { %v1278_v28 = vadd.f32 %v3164_v16, %v1277_v25 }
 0x2d5   : > { %2407 = vtanh.f32 %v1278_v28  ;;  %v2174_v29 = vpop.f32.mrb[26].mxu0  ;;  %v1534_v26 = vpop.permute.xlu1 %1533 }
 0x2d6   : > { %2409 = vtanh.f32 %v1283_v27  ;;  %v1293_v30 = vadd.f32 %v2174_v29, %v3164_v16  ;;  %v1287_v33 = vpop.f32.mrb[27].mxu0 }
 0x2d7   : > { %v1288_v31 = vadd.f32 %v3164_v16, %v1287_v33 }
 0x2d9   : > { %2411 = vtanh.f32 %v1288_v31  ;;  %v1532_v25 = vpop.permute.xlu1 %1531 }
 0x2da   : > { %v2404_v36 = vpop.eup %2403  ;;  %2413 = vtanh.f32 %v1293_v30 }
 0x2db   : > { %v2406_v37 = vpop.eup %2405  ;;  %2222 = vmatprep.mubr.f32.mxu1 %v2404_v36 }
 0x2dc   : > { %v2177_v21 = vpop.f32.mrb[28].mxu0  ;;  %2223 = vmatmul.mubr.f32.vlgmr.msra.gmra.mrb[26].mxu1 %v2406_v37 }
 0x2dd   : > { %v1303_v38 = vadd.f32 %v2177_v21, %v3164_v16  ;;  %v1297_v39 = vpop.f32.mrb[29].mxu0  ;;  %v3212_v29 = vpop.permute.xlu1 %1609 }
 0x2de   : > { %v1298_v40 = vadd.f32 %v3164_v16, %v1297_v39 }
 0x2df   : > { %v2408_v41 = vpop.eup %2407 }
 0x2e0   : > { %v2410_v44 = vpop.eup %2409  ;;  %2415 = vtanh.f32 %v1298_v40  ;;  %2225 = vmatprep.mubr.f32.mxu1 %v2408_v41 }
 0x2e1   : > { %2417 = vtanh.f32 %v1303_v38  ;;  %2226 = vmatmul.mubr.f32.gmra.mrb[28].mxu1 %v2410_v44  ;;  %v3214_v33 = vpop.permute.xlu1 %1665 }
 0x2e3   : > { %v2412_v20 = vpop.eup %2411 }
 0x2e4   : > { %v2414_v46 = vpop.eup %2413  ;;  %v2180_v47 = vpop.f32.mrb[30].mxu0  ;;  %2228 = vmatprep.mubr.f32.mxu1 %v2412_v20 }
 0x2e5   : > { %v1313_v24 = vadd.f32 %v2180_v47, %v3164_v16  ;;  %v1307_v48 = vpop.f32.mrb[31].mxu0  ;;  %2229 = vmatmul.mubr.f32.gmra.mrb[30].mxu1 %v2414_v46  ;;  %v3218_v36 = vpop.permute.xlu1 %1737 }
 0x2e6   : > { %v1308_v49 = vadd.f32 %v3164_v16, %v1307_v48 }
 0x2e8   : > { %2419 = vtanh.f32 %v1308_v49 }
 0x2e9   : > { %2421 = vtanh.f32 %v1313_v24  ;;  %v1538_v21 = vpop.permute.xlu1 %1537 }
 0x2ea   : > { %v2416_v50 = vpop.eup %2415 }
 0x2eb   : > { %v2418_v53 = vpop.eup %2417  ;;  %2231 = vmatprep.mubr.f32.mxu1 %v2416_v50 }
 0x2ec   : > { %v2183_v32 = vpop.f32.mrb[32].mxu0  ;;  %2232 = vmatmul.mubr.f32.gmra.mrb[32].mxu1 %v2418_v53 }
 0x2ed   : > { %v1323_v23 = vadd.f32 %v2183_v32, %v3164_v16  ;;  %v1317_v55 = vpop.f32.mrb[33].mxu0  ;;  %v3224_v39 = vpop.permute.xlu1 %1613  ;;  %v3251_v32 = vld [vmem:[%s3433_s8 + $0x3] ss:$0 sm:$0xff] }
 0x2ee   : > { %v1318_v56 = vadd.f32 %v3164_v16, %v1317_v55 }
 0x2f0   : > { %2423 = vtanh.f32 %v1318_v56 }
 0x2f1   : > { %2425 = vtanh.f32 %v1323_v23  ;;  %v3228_v41 = vpop.permute.xlu1 %1669 }
 0x2f2   : > { %v2420_v57 = vpop.eup %2419 }
 0x2f3   : > { %v2422_v19 = vpop.eup %2421  ;;  %2234 = vmatprep.mubr.f32.mxu1 %v2420_v57 }
 0x2f4   : > { %v2186_v34 = vpop.f32.mrb[34].mxu0  ;;  %2235 = vmatmul.mubr.f32.gmra.mrb[34].mxu1 %v2422_v19 }
 0x2f5   : > { %v1333_v35 = vadd.f32 %v2186_v34, %v3164_v16  ;;  %v1327_v58 = vpop.f32.mrb[35].mxu0  ;;  %v3232_v20 = vpop.permute.xlu1 %1741 }
 0x2f6   : > { %v1328_v42 = vadd.f32 %v3164_v16, %v1327_v58 }
 0x2f8   : > { %2427 = vtanh.f32 %v1328_v42 }
 0x2f9   : > { %2429 = vtanh.f32 %v1333_v35  ;;  %v3236_v47 = vpop.permute.xlu1 %1541 }
 0x2fa   : > { %v2424_v59 = vpop.eup %2423 }
 0x2fb   : > { %v2426_v43 = vpop.eup %2425  ;;  %2237 = vmatprep.mubr.f32.mxu1 %v2424_v59 }
 0x2fc   : > { %v2189_v45 = vpop.f32.mrb[36].mxu0  ;;  %2238 = vmatmul.mubr.f32.gmra.mrb[36].mxu1 %v2426_v43 }
 0x2fd   : > { %v1343_v51 = vadd.f32 %v2189_v45, %v3164_v16  ;;  %v1337_v52 = vpop.f32.mrb[37].mxu0  ;;  %v3240_v48 = vpop.permute.xlu1 %1617 }
 0x2fe   : > { %v1338_v54 = vadd.f32 %v3164_v16, %v1337_v52  ;;  %v1656_v16 = vpop.permute.xlu0 %1655 }
 0x300   : > { %2431 = vtanh.f32 %v1338_v54 }
 0x301   : > { %2433 = vtanh.f32 %v1343_v51  ;;  %v3244_v50 = vpop.permute.xlu1 %1673 }
 0x302   : > { %v2428_v60 = vpop.eup %2427  ;;  %v3206_v17 = vpop.permute.xlu0 %1731 }
 0x303   : > { %v2430_v61 = vpop.eup %2429  ;;  %2240 = vmatprep.mubr.f32.mxu1 %v2428_v60 }
 0x304   : > { %2241 = vmatmul.mubr.f32.gmra.mrb[38].mxu1 %v2430_v61 }
 0x305   : > { %v3253_v23 = vpop.permute.xlu1 %1745 }
 0x306   : > { %v1528_v22 = vpop.permute.xlu0 %1527 }
 0x309   : > { %v3268_v59 = vpop.permute.xlu1 %1545 }
 0x30a   : > { %v2432_v62 = vpop.eup %2431  ;;  %v1530_v27 = vpop.permute.xlu0 %1529 }
 0x30b   : > { %v2434_v63 = vpop.eup %2433  ;;  %2243 = vmatprep.mubr.f32.mxu1 %v2432_v62 }
 0x30c   : > { %2244 = vmatmul.mubr.f32.gmra.mrb[40].mxu1 %v2434_v63 }
 0x30e   : > { %v3210_v28 = vpop.permute.xlu0 %1607 }
 0x312   : > { %v1660_v30 = vpop.permute.xlu0 %1659 }
 0x316   : > { %v3216_v31 = vpop.permute.xlu0 %1663 }
 0x31a   : > { %v3220_v37 = vpop.permute.xlu0 %1735 }
 0x31e   : > { %v3222_v38 = vpop.permute.xlu0 %1535 }
 0x322   : > { %v3226_v40 = vpop.permute.xlu0 %1611 }
 0x326   : > { %v3230_v44 = vpop.permute.xlu0 %1667 }
 0x32a   : > { %v3234_v46 = vpop.permute.xlu0 %1739 }
 0x32e   : > { %v3238_v24 = vpop.permute.xlu0 %1539 }
 0x332   : > { %v3242_v49 = vpop.permute.xlu0 %1615 }
 0x336   : > { %v3246_v53 = vpop.permute.xlu0 %1671 }
 0x33a   : > { %v3255_v55 = vpop.permute.xlu0 %1743 }
 0x33e   : > { %v3272_v52 = vpop.permute.xlu0 %1543 }
 0x3af   : > { %v2224_v56 = vpop.f32.mrb[26].mxu1 }
 0x3b0   : > { %v1454_v57 = vadd.f32 %v2224_v56, %v3251_v32  ;;  %v1448_v19 = vpop.f32.mrb[27].mxu1 }
 0x3b1   : > { %v1449_v34 = vadd.f32 %v3251_v32, %v1448_v19 }
 0x3b2   : > { %v1768_v35 = vsel %vm617_vm1, %v1454_v57, %v1530_v27 }
 0x3b3   : > { %v1785_v58 = vsel %vm1783_vm2, %v1768_v35, %v1594_v2  ;;  %v1767_v42 = vsel %vm617_vm1, %v1449_v34, %v1528_v22  ;;  %v3293_v34 = vpop.permute.xlu1 %1621  ;;  %v3299_v35 = vpop.permute.xlu0 %1619 }
 0x3b4   : > { %v1802_v43 = vsel %vm1800_vm3, %v1785_v58, %v1658_v14  ;;  %v1784_v45 = vsel %vm1783_vm2, %v1767_v42, %v1592_v1  ;;  %v2227_v51 = vpop.f32.mrb[28].mxu1 }
 0x3b5   : > { %v1819_v54 = vsel %vm1817_vm4, %v1802_v43, %v1722_v6  ;;  %v1801_v60 = vsel %vm1800_vm3, %v1784_v45, %v1656_v16  ;;  %v1464_v61 = vadd.f32 %v2227_v51, %v3251_v32  ;;  %v1458_v62 = vpop.f32.mrb[29].mxu1 }
 0x3b6   : > { %v1836_v63 = vsel %vm1834_vm5, %v1819_v54, 0.0  ;;  %v1818_v2 = vsel %vm1817_vm4, %v1801_v60, %v3184_v3  ;;  %v1459_v22 = vadd.f32 %v3251_v32, %v1458_v62 }
 0x3b7   : > { %1852 = vst [vmem:[%s3266_s19 + $0x8] sm:$0xff] %v1836_v63  ;;  %v1835_v1 = vsel %vm1834_vm5, %v1818_v2, 0.0  ;;  %v1770_v14 = vsel %vm617_vm1, %v1464_v61, %v1534_v26  ;;  %v1676_v61 = vpop.permute.xlu0 %1675 }
 0x3b8   : > { %1851 = vst [vmem:[%s3266_s19] sm:$0xff] %v1835_v1  ;;  %v1787_v6 = vsel %vm1783_vm2, %v1770_v14, %v3182_v0  ;;  %v1769_v16 = vsel %vm617_vm1, %v1459_v22, %v1532_v25  ;;  %v2230_v27 = vpop.f32.mrb[30].mxu1 }
 0x3b9   : > { %v1804_v56 = vsel %vm1800_vm3, %v1787_v6, %v3200_v12  ;;  %v1786_v3 = vsel %vm1783_vm2, %v1769_v16, %v3188_v5  ;;  %v1474_v57 = vadd.f32 %v2230_v27, %v3251_v32  ;;  %v1468_v19 = vpop.f32.mrb[31].mxu1 }
 0x3ba   : > { %v1821_v26 = vsel %vm1817_vm4, %v1804_v56, %v3186_v4  ;;  %v1803_v0 = vsel %vm1800_vm3, %v1786_v3, %v1660_v30  ;;  %v1469_v25 = vadd.f32 %v3251_v32, %v1468_v19 }
 0x3bb   : > { %v1838_v12 = vsel %vm1834_vm5, %v1821_v26, 0.0  ;;  %v1820_v5 = vsel %vm1817_vm4, %v1803_v0, %v3194_v9  ;;  %v1772_v58 = vsel %vm617_vm1, %v1474_v57, %v1538_v21  ;;  %v1548_v6 = vpop.permute.xlu0 %1547 }
 0x3bc   : > { %1854 = vst [vmem:[%s3266_s19 + $0x18] sm:$0xff] %v1838_v12  ;;  %v1837_v42 = vsel %vm1834_vm5, %v1820_v5, 0.0  ;;  %v1789_v4 = vsel %vm1783_vm2, %v1772_v58, %v3192_v8  ;;  %v1771_v30 = vsel %vm617_vm1, %v1469_v25, %v3222_v38  ;;  %v1678_v38 = vpop.permute.xlu1 %1677 }
 0x3bd   : > { %1853 = vst [vmem:[%s3266_s19 + $0x10] sm:$0xff] %v1837_v42  ;;  %v1806_v43 = vsel %vm1800_vm3, %v1789_v4, %v3214_v33  ;;  %v1788_v45 = vsel %vm1783_vm2, %v1771_v30, %v3190_v7 }
 0x3be   : > { %v1823_v9 = vsel %vm1817_vm4, %v1806_v43, %v3196_v10  ;;  %v1805_v21 = vsel %vm1800_vm3, %v1788_v45, %v3216_v31 }
 0x3bf   : > { %v1840_v51 = vsel %vm1834_vm5, %v1823_v9, 0.0  ;;  %v1822_v8 = vsel %vm1817_vm4, %v1805_v21, %v3198_v11  ;;  %v2233_v54 = vpop.f32.mrb[32].mxu1  ;;  %v1680_v19 = vpop.permute.xlu0 %1679 }
 0x3c0   : > { %1856 = vst [vmem:[%s3266_s19 + $0x28] sm:$0xff] %v1840_v51  ;;  %v1839_v60 = vsel %vm1834_vm5, %v1822_v8, 0.0  ;;  %v1484_v33 = vadd.f32 %v2233_v54, %v3251_v32  ;;  %v1478_v7 = vpop.f32.mrb[33].mxu1  ;;  %v1550_v14 = vpop.permute.xlu1 %1549 }
 0x3c1   : > { %1855 = vst [vmem:[%s3266_s19 + $0x20] sm:$0xff] %v1839_v60  ;;  %v1479_v10 = vadd.f32 %v3251_v32, %v1478_v7 }
 0x3c2   : > { %v1774_v31 = vsel %vm617_vm1, %v1484_v33, %v3236_v47 }
 0x3c3   : > { %v1791_v11 = vsel %vm1783_vm2, %v1774_v31, %v3204_v15  ;;  %v1773_v62 = vsel %vm617_vm1, %v1479_v10, %v3238_v24  ;;  %v1552_v5 = vpop.permute.xlu0 %1551 }
 0x3c4   : > { %v1808_v63 = vsel %vm1800_vm3, %v1791_v11, %v3228_v41  ;;  %v1790_v2 = vsel %vm1783_vm2, %v1773_v62, %v3202_v13  ;;  %v1682_v56 = vpop.permute.xlu1 %1681 }
 0x3c5   : > { %v1825_v22 = vsel %vm1817_vm4, %v1808_v63, %v3208_v18  ;;  %v1807_v1 = vsel %vm1800_vm3, %v1790_v2, %v3230_v44 }
 0x3c6   : > { %v1842_v47 = vsel %vm1834_vm5, %v1825_v22, 0.0  ;;  %v1824_v15 = vsel %vm1817_vm4, %v1807_v1, %v3206_v17 }
 0x3c7   : > { %1858 = vst [vmem:[%s3266_s19 + $0x38] sm:$0xff] %v1842_v47  ;;  %v1841_v24 = vsel %vm1834_vm5, %v1824_v15, 0.0  ;;  %v2236_v41 = vpop.f32.mrb[34].mxu1  ;;  %v1684_v54 = vpop.permute.xlu0 %1683 }
 0x3c8   : > { %1857 = vst [vmem:[%s3266_s19 + $0x30] sm:$0xff] %v1841_v24  ;;  %v1494_v13 = vadd.f32 %v2236_v41, %v3251_v32  ;;  %v1488_v16 = vpop.f32.mrb[35].mxu1 }
 0x3c9   : > { %v1489_v18 = vadd.f32 %v3251_v32, %v1488_v16 }
 0x3ca   : > { %v1776_v44 = vsel %vm617_vm1, %v1494_v13, %v3268_v59 }
 0x3cb   : > { %v1793_v27 = vsel %vm1783_vm2, %v1776_v44, %v3212_v29  ;;  %v1775_v17 = vsel %vm617_vm1, %v1489_v18, %v3272_v52  ;;  %v1556_v63 = vpop.permute.xlu0 %1555 }
 0x3cc   : > { %v1810_v3 = vsel %vm1800_vm3, %v1793_v27, %v3244_v50  ;;  %v1792_v57 = vsel %vm1783_vm2, %v1775_v17, %v3210_v28 }
 0x3cd   : > { %v1827_v26 = vsel %vm1817_vm4, %v1810_v3, %v3218_v36  ;;  %v1809_v59 = vsel %vm1800_vm3, %v1792_v57, %v3246_v53  ;;  %v1554_v36 = vpop.permute.xlu1 %1553 }
 0x3ce   : > { %v1844_v0 = vsel %vm1834_vm5, %v1827_v26, 0.0  ;;  %v1826_v29 = vsel %vm1817_vm4, %v1809_v59, %v3220_v37 }
 0x3cf   : > { %1860 = vst [vmem:[%s3266_s19 + $0x48] sm:$0xff] %v1844_v0  ;;  %v1843_v52 = vsel %vm1834_vm5, %v1826_v29, 0.0  ;;  %v2239_v25 = vpop.f32.mrb[36].mxu1  ;;  %v1748_v24 = vpop.permute.xlu0 %1747 }
 0x3d0   : > { %1859 = vst [vmem:[%s3266_s19 + $0x40] sm:$0xff] %v1843_v52  ;;  %v1504_v28 = vadd.f32 %v2239_v25, %v3251_v32  ;;  %v1498_v50 = vpop.f32.mrb[37].mxu1 }
 0x3d1   : > { %v1499_v12 = vadd.f32 %v3251_v32, %v1498_v50  ;;  %v1686_v51 = vpop.permute.xlu1 %1685 }
 0x3d2   : > { %v1778_v53 = vsel %vm617_vm1, %v1504_v28, %v1550_v14 }
 0x3d3   : > { %v1795_v58 = vsel %vm1783_vm2, %v1778_v53, %v3224_v39  ;;  %v1777_v37 = vsel %vm617_vm1, %v1499_v12, %v1548_v6 }
 0x3d4   : > { %v1812_v42 = vsel %vm1800_vm3, %v1795_v58, %v1678_v38  ;;  %v1794_v4 = vsel %vm1783_vm2, %v1777_v37, %v3226_v40 }
 0x3d5   : > { %v1829_v30 = vsel %vm1817_vm4, %v1812_v42, %v3232_v20  ;;  %v1811_v43 = vsel %vm1800_vm3, %v1794_v4, %v1676_v61  ;;  %v1558_v31 = vpop.permute.xlu1 %1557 }
 0x3d6   : > { %v1846_v45 = vsel %vm1834_vm5, %v1829_v30, 0.0  ;;  %v1828_v9 = vsel %vm1817_vm4, %v1811_v43, %v3234_v46 }
 0x3d7   : > { %1862 = vst [vmem:[%s3266_s19 + $0x58] sm:$0xff] %v1846_v45  ;;  %v1845_v39 = vsel %vm1834_vm5, %v1828_v9, 0.0  ;;  %v2242_v21 = vpop.f32.mrb[38].mxu1 }
 0x3d8   : > { %1861 = vst [vmem:[%s3266_s19 + $0x50] sm:$0xff] %v1845_v39  ;;  %v1514_v8 = vadd.f32 %v2242_v21, %v3251_v32  ;;  %v1508_v40 = vpop.f32.mrb[39].mxu1 }
 0x3d9   : > { %v1509_v20 = vadd.f32 %v3251_v32, %v1508_v40  ;;  %v1750_v47 = vpop.permute.xlu1 %1749 }
 0x3da   : > { %v1780_v38 = vsel %vm617_vm1, %v1514_v8, %v1554_v36 }
 0x3db   : > { %v1797_v60 = vsel %vm1783_vm2, %v1780_v38, %v3240_v48  ;;  %v1779_v46 = vsel %vm617_vm1, %v1509_v20, %v1552_v5 }
 0x3dc   : > { %v1814_v33 = vsel %vm1800_vm3, %v1797_v60, %v1682_v56  ;;  %v1796_v7 = vsel %vm1783_vm2, %v1779_v46, %v3242_v49 }
 0x3dd   : > { %v1831_v61 = vsel %vm1817_vm4, %v1814_v33, %v3253_v23  ;;  %v1813_v10 = vsel %vm1800_vm3, %v1796_v7, %v1680_v19 }
 0x3de   : > { %v1848_v11 = vsel %vm1834_vm5, %v1831_v61, 0.0  ;;  %v1830_v62 = vsel %vm1817_vm4, %v1813_v10, %v3255_v55 }
 0x3df   : > { %1864 = vst [vmem:[%s3266_s19 + $0x68] sm:$0xff] %v1848_v11  ;;  %v1847_v48 = vsel %vm1834_vm5, %v1830_v62, 0.0  ;;  %v2245_v2 = vpop.f32.mrb[40].mxu1 }
 0x3e0   : > { %1863 = vst [vmem:[%s3266_s19 + $0x60] sm:$0xff] %v1847_v48  ;;  %v1524_v49 = vadd.f32 %v2245_v2, %v3251_v32  ;;  %v1518_v22 = vpop.f32.mrb[41].mxu1 }
 0x3e1   : > { %v1519_v23 = vadd.f32 %v3251_v32, %v1518_v22 }
 0x3e2   : > { %v1782_v1 = vsel %vm617_vm1, %v1524_v49, %v1558_v31 }
 0x3e3   : > { %v1799_v14 = vsel %vm1783_vm2, %v1782_v1, %v3293_v34  ;;  %v1781_v55 = vsel %vm617_vm1, %v1519_v23, %v1556_v63 }
 0x3e4   : > { %v1816_v15 = vsel %vm1800_vm3, %v1799_v14, %v1686_v51  ;;  %v1798_v6 = vsel %vm1783_vm2, %v1781_v55, %v3299_v35 }
 0x3e5   : > { %v1833_v41 = vsel %vm1817_vm4, %v1816_v15, %v1750_v47  ;;  %v1815_v13 = vsel %vm1800_vm3, %v1798_v6, %v1684_v54 }
 0x3e6   : > { %v1850_v32 = vsel %vm1834_vm5, %v1833_v41, 0.0  ;;  %v1832_v16 = vsel %vm1817_vm4, %v1815_v13, %v1748_v24 }
 0x3e7   : > { %1866 = vst [vmem:[%s3266_s19 + $0x78] sm:$0xff] %v1850_v32  ;;  %v1849_v34 = vsel %vm1834_vm5, %v1832_v16, 0.0 }
 0x3e8   : > { %1865 = vst [vmem:[%s3266_s19 + $0x70] sm:$0xff] %v1849_v34 }
 0x3e9 PF: > { %s19_s30 = sadd.s32 1, %s2441_s30  }
 0x3ea   : > { %p16_p4 = scmp.ge.s32.totalorder %s19_s30, 4  }
 0x3ec   :  { %18 = sbr.rel (!%p16_p4) target bundleno = 1 (0x1), region = 93 }

</bundles_post_ra>
